<compile_context>
chip_gen: v6e
topology: v6e:2x2x1
jax: 0.10.0
libtpu: 0.0.40
codegen_flags: <defaults>
</compile_context>

<pallas_src>
import functools
import math

import jax
import jax.numpy as jnp
from jax.experimental import pallas as pl
from jax.experimental.pallas import tpu as pltpu


# ---------------------------------------------------------------------------
# small helpers
# ---------------------------------------------------------------------------

def _round_up(n, m):
    return ((n + m - 1) // m) * m


def _mm(a, b):
    """MXU matmul: bf16 operands, f32 accumulation."""
    return jnp.dot(a.astype(jnp.bfloat16), b.astype(jnp.bfloat16),
                   preferred_element_type=jnp.float32)


def _ln(x, g, b, eps=1e-5):
    mu = jnp.mean(x, axis=-1, keepdims=True)
    var = jnp.mean(jnp.square(x - mu), axis=-1, keepdims=True)
    return (x - mu) * jax.lax.rsqrt(var + eps) * g + b


_SINGLE_BUF_OK = None


def _single_buf_ok():
    """Probe once whether this jax build supports pl.Buffered(1) weight specs."""
    global _SINGLE_BUF_OK
    if _SINGLE_BUF_OK is None:
        try:
            def _k(x_ref, w_ref, o_ref):
                o_ref[...] = x_ref[...] + w_ref[...]

            w_spec = pl.BlockSpec((8, 128), lambda i: (0, 0),
                                  pipeline_mode=pl.Buffered(1))
            r = pl.pallas_call(
                _k,
                out_shape=jax.ShapeDtypeStruct((8, 128), jnp.float32),
                grid=(2,),
                in_specs=[pl.BlockSpec((8, 128), lambda i: (0, 0)), w_spec],
                out_specs=pl.BlockSpec((8, 128), lambda i: (0, 0)),
            )(jnp.ones((8, 128), jnp.float32), jnp.ones((8, 128), jnp.float32))
            jax.block_until_ready(r)
            _SINGLE_BUF_OK = True
        except Exception:
            _SINGLE_BUF_OK = False
    return _SINGLE_BUF_OK


def _rep(*shape):
    """BlockSpec for a weight replicated across the grid.

    Constant index map => fetched once; single-buffered when supported so the
    pipeline does not allocate a useless second VMEM copy of each weight.
    """
    idx = lambda *args, _n=len(shape): (0,) * _n
    if _single_buf_ok():
        return pl.BlockSpec(shape, idx, pipeline_mode=pl.Buffered(1))
    return pl.BlockSpec(shape, idx)


def _arr_bytes(*arrs):
    return sum(int(a.size) * int(a.dtype.itemsize) for a in arrs)


def _cp(sems, est_bytes):
    """CompilerParams with an explicit VMEM budget (kept under v7x's 64 MiB)."""
    return pltpu.CompilerParams(
        dimension_semantics=sems,
        vmem_limit_bytes=int(min(64 << 20, max(32 << 20, est_bytes))))


def _pick_tile_v(v_pad):
    for t in (512, 256, 128):
        if v_pad % t == 0:
            return t
    return v_pad


# ---------------------------------------------------------------------------
# in-kernel attention: all heads batched, consolidated out-projection input
# ---------------------------------------------------------------------------

def _mha(q, k, v, add_mask, n_head, *, exact=False):
    """q: (Lq, D) f32, k/v: (Lk, D) f32, add_mask broadcastable to (., Lq, Lk).

    Returns (ctx (Lq, D) f32, probs (H, Lq, Lk) f32).  QK^T and P@V run as
    head-batched einsums; ctx comes back lane-concatenated so the caller does a
    single full-depth (Lq, D) @ (D, D) out-projection.
    """
    Lq, D = q.shape
    Dh = D // n_head
    scale = Dh ** -0.5

    def heads(x, s=None):
        cols = []
        for h in range(n_head):
            xh = x[:, h * Dh:(h + 1) * Dh]
            if s is not None:
                xh = xh * s
            cols.append(xh.astype(jnp.bfloat16))
        return jnp.stack(cols, axis=0)                      # (H, L, Dh) bf16

    qh, kh, vh = heads(q, scale), heads(k), heads(v)
    s = jnp.einsum("hqd,hkd->hqk", qh, kh,
                   preferred_element_type=jnp.float32) + add_mask
    s = s - jnp.max(s, axis=-1, keepdims=True)
    e = jnp.exp(s)
    p = e * pl.reciprocal(jnp.sum(e, axis=-1, keepdims=True), approx=not exact)
    ctx = jnp.einsum("hqk,hkd->hqd", p.astype(jnp.bfloat16), vh,
                     preferred_element_type=jnp.float32)    # (H, Lq, Dh) f32
    ctx = jnp.concatenate([ctx[h] for h in range(n_head)], axis=-1)   # (Lq, D)
    return ctx, p


# ---------------------------------------------------------------------------
# Pallas kernels
# ---------------------------------------------------------------------------

def _encoder_layer_kernel(*refs, n_head, has_in_proj, has_final_ln):
    refs = list(refs)
    y_ref = refs.pop()
    it = iter(refs)
    x_ref = next(it)
    mask_ref = next(it)
    if has_in_proj:
        win_ref, binp_ref = next(it), next(it)
    (ln1g, ln1b, wqkv, bqkv, wo, bo,
     ln2g, ln2b, w1, b1, w2, b2) = [next(it) for _ in range(12)]
    if has_final_ln:
        flng, flnb = next(it), next(it)

    x = x_ref[...]                                    # (S, D_in) f32
    if has_in_proj:
        x = _mm(x, win_ref[...]) + binp_ref[...]      # fused encoder input_fc
    D = x.shape[-1]

    # ---- pre-LN self attention ----
    h = _ln(x, ln1g[...], ln1b[...])
    qkv = _mm(h, wqkv[...]) + bqkv[...]               # (S, 3D)
    add_mask = ((1.0 - mask_ref[...]) * (-1e9))[None]  # (1, 1, S) key padding
    ctx, _ = _mha(qkv[:, :D], qkv[:, D:2 * D], qkv[:, 2 * D:], add_mask, n_head)
    x = x + _mm(ctx, wo[...]) + bo[...]               # single out-projection

    # ---- pre-LN FFN ----
    h = _ln(x, ln2g[...], ln2b[...])
    f = jnp.maximum(_mm(h, w1[...]) + b1[...], 0.0)
    x = x + _mm(f, w2[...]) + b2[...]

    if has_final_ln:
        x = _ln(x, flng[...], flnb[...])              # fused final encoder LN
    y_ref[...] = x


def _decoder_layer_kernel(*refs, n_head, has_in_proj, collect_attn):
    refs = list(refs)
    attn_ref = refs.pop() if collect_attn else None
    y_ref = refs.pop()
    it = iter(refs)
    x_ref, mem_ref, mask_ref = next(it), next(it), next(it)
    if has_in_proj:
        win_ref, binp_ref = next(it), next(it)
    (ln1g, ln1b, wqkv, bqkv, wos, bos,
     ln2g, ln2b, wqc, bqc, wkvc, bkvc, woc, boc,
     ln3g, ln3b, w1, b1, w2, b2) = [next(it) for _ in range(20)]

    x = x_ref[...]                                    # (T, D_in) f32
    mem = mem_ref[...]                                # (S, D) f32
    if has_in_proj:
        x = _mm(x, win_ref[...]) + binp_ref[...]      # fused decoder input_fc
    T = x.shape[0]
    D = x.shape[-1]

    # ---- causal self attention, pre-LN ----
    h = _ln(x, ln1g[...], ln1b[...])
    qkv = _mm(h, wqkv[...]) + bqkv[...]               # (T, 3D)
    row = jax.lax.broadcasted_iota(jnp.int32, (T, T), 0)
    col = jax.lax.broadcasted_iota(jnp.int32, (T, T), 1)
    causal = jnp.where(col <= row, 0.0, -1e9).astype(jnp.float32)[None]
    ctx, _ = _mha(qkv[:, :D], qkv[:, D:2 * D], qkv[:, 2 * D:], causal, n_head)
    x = x + _mm(ctx, wos[...]) + bos[...]

    # ---- cross attention over encoder memory, pre-LN ----
    h = _ln(x, ln2g[...], ln2b[...])
    q = _mm(h, wqc[...]) + bqc[...]                   # (T, D)
    kv = _mm(mem, wkvc[...]) + bkvc[...]              # (S, 2D)
    add_mask = ((1.0 - mask_ref[...]) * (-1e9))[None]  # (1, 1, S)
    # exact softmax reciprocal in the layer whose attention feeds the copy dist
    ctx, p = _mha(q, kv[:, :D], kv[:, D:], add_mask, n_head, exact=collect_attn)
    x = x + _mm(ctx, woc[...]) + boc[...]
    if collect_attn:
        attn_ref[...] = jnp.mean(p, axis=0)           # head-mean, last layer only

    # ---- pre-LN FFN ----
    h = _ln(x, ln3g[...], ln3b[...])
    f = jnp.maximum(_mm(h, w1[...]) + b1[...], 0.0)
    y_ref[...] = x + _mm(f, w2[...]) + b2[...]


def _output_head_kernel(x_ref, attn_ref, oov_ref, lng_ref, lnb_ref,
                        wcat_ref, bcat_ref, embt_ref, out_ref,
                        h_s, pg_s, m_s, l_s, *, vocab_size, tile_v):
    """V-tiled copy/generate head.  grid = (B, pass, v_tile):
       pass 0: online max / sum-exp of the masked logits over vocab tiles.
       pass 1: normalized vocab softmax tile + per-tile one-hot copy tile mix.
    """
    p = pl.program_id(1)
    j = pl.program_id(2)
    D = x_ref.shape[-1]

    @pl.when(jnp.logical_and(p == 0, j == 0))
    def _():
        # fused final decoder LN -> output_fc (p_gen column folded in)
        xn = _ln(x_ref[...], lng_ref[...], lnb_ref[...])          # (T, D)
        r = _mm(xn, wcat_ref[...]) + bcat_ref[...]                # (T, D+1)
        h_s[...] = r[:, :D].astype(jnp.bfloat16)
        # TODO(synk): exact p_gen feature composition in kg_one2set also
        # conditions on cross-attn context / input embedding; here it is
        # sigmoid(Linear(d_model, 1)) on the final decoder hidden state.
        pg_s[...] = 1.0 / (1.0 + jnp.exp(-r[:, D:D + 1]))         # (T, 1)
        m_s[...] = jnp.full(m_s.shape, -1e30, m_s.dtype)
        l_s[...] = jnp.zeros(l_s.shape, l_s.dtype)

    # logits for the current vocab tile (recomputed on both passes)
    col0 = j * tile_v
    lane = jax.lax.broadcasted_iota(jnp.int32, (1, tile_v), 1) + col0
    logits = _mm(h_s[...], embt_ref[...])                         # (T, tile_v)
    logits = jnp.where(lane < vocab_size, logits, -1e30)          # gen vocab only

    @pl.when(p == 0)
    def _():
        m_old = m_s[...]
        m_new = jnp.maximum(m_old, jnp.max(logits, axis=-1, keepdims=True))
        l_s[...] = (l_s[...] * jnp.exp(m_old - m_new)
                    + jnp.sum(jnp.exp(logits - m_new), axis=-1, keepdims=True))
        m_s[...] = m_new

    @pl.when(p == 1)
    def _():
        vocab_tile = jnp.exp(logits - m_s[...]) * pl.reciprocal(l_s[...],
                                                                approx=False)
        S = attn_ref.shape[-1]
        # one_hot(src_oov) built only for this vocab tile, from a sublane iota
        # against the lane-dense (1, S) oov row (duplicate ids still sum,
        # matching scatter_add); the mix matmul stays f32 for accuracy.
        v_ids = col0 + jax.lax.broadcasted_iota(jnp.int32, (tile_v, S), 0)
        one_hot_t = (v_ids == oov_ref[...]).astype(jnp.float32)   # (tile_v, S)
        copy_tile = jax.lax.dot_general(
            attn_ref[...], one_hot_t, (((1,), (1,)), ((), ())),
            preferred_element_type=jnp.float32)                   # (T, tile_v)
        pg = pg_s[...]
        out_ref[...] = pg * vocab_tile + (1.0 - pg) * copy_tile


# ---------------------------------------------------------------------------
# Pallas wrappers (one fused pallas_call per layer / head, gridded over batch)
# ---------------------------------------------------------------------------

def encoder_layer(x, src_mask3, lp, n_head, in_proj=None, final_ln=None):
    B, S, D_in = x.shape
    D = lp["wqkv"].shape[0]
    FF = lp["w1"].shape[1]

    in_specs = [pl.BlockSpec((None, S, D_in), lambda b: (b, 0, 0)),
                pl.BlockSpec((None, 1, S), lambda b: (b, 0, 0))]
    args = [x, src_mask3]
    if in_proj is not None:
        in_specs += [_rep(D_in, D), _rep(1, D)]
        args += [in_proj[0], in_proj[1]]
    in_specs += [_rep(1, D), _rep(1, D),                      # ln1
                 _rep(D, 3 * D), _rep(1, 3 * D),              # fused QKV
                 _rep(D, D), _rep(1, D),                      # out proj
                 _rep(1, D), _rep(1, D),                      # ln2
                 _rep(D, FF), _rep(1, FF), _rep(FF, D), _rep(1, D)]   # FFN
    args += [lp["ln1_g"], lp["ln1_b"], lp["wqkv"], lp["bqkv"], lp["wo"], lp["bo"],
             lp["ln2_g"], lp["ln2_b"], lp["w1"], lp["b1"], lp["w2"], lp["b2"]]
    if final_ln is not None:
        in_specs += [_rep(1, D), _rep(1, D)]
        args += [final_ln[0], final_ln[1]]

    kernel = functools.partial(_encoder_layer_kernel, n_head=n_head,
                               has_in_proj=in_proj is not None,
                               has_final_ln=final_ln is not None)
    est = (_arr_bytes(*args[2:])
           + 4 * (S * D_in + S * D + S) * 4
           + (S * 3 * D + 2 * n_head * S * S + S * FF) * 4
           + (8 << 20))
    return pl.pallas_call(
        kernel,
        out_shape=jax.ShapeDtypeStruct((B, S, D), jnp.float32),
        grid=(B,),
        in_specs=in_specs,
        out_specs=pl.BlockSpec((None, S, D), lambda b: (b, 0, 0)),
        compiler_params=_cp(("parallel",), est),
    )(*args)


def decoder_layer(x, memory, src_mask3, lp, n_head, in_proj=None,
                  collect_attn=False):
    B, T, D_in = x.shape
    S = memory.shape[1]
    D = lp["wqkv_s"].shape[0]
    FF = lp["w1"].shape[1]

    in_specs = [pl.BlockSpec((None, T, D_in), lambda b: (b, 0, 0)),
                pl.BlockSpec((None, S, D), lambda b: (b, 0, 0)),
                pl.BlockSpec((None, 1, S), lambda b: (b, 0, 0))]
    args = [x, memory, src_mask3]
    if in_proj is not None:
        in_specs += [_rep(D_in, D), _rep(1, D)]
        args += [in_proj[0], in_proj[1]]
    in_specs += [_rep(1, D), _rep(1, D),                      # ln1
                 _rep(D, 3 * D), _rep(1, 3 * D),              # self fused QKV
                 _rep(D, D), _rep(1, D),                      # self out proj
                 _rep(1, D), _rep(1, D),                      # ln2
                 _rep(D, D), _rep(1, D),                      # cross Q
                 _rep(D, 2 * D), _rep(1, 2 * D),              # cross fused KV
                 _rep(D, D), _rep(1, D),                      # cross out proj
                 _rep(1, D), _rep(1, D),                      # ln3
                 _rep(D, FF), _rep(1, FF), _rep(FF, D), _rep(1, D)]   # FFN
    args += [lp["ln1_g"], lp["ln1_b"], lp["wqkv_s"], lp["bqkv_s"],
             lp["wo_s"], lp["bo_s"], lp["ln2_g"], lp["ln2_b"],
             lp["wq_c"], lp["bq_c"], lp["wkv_c"], lp["bkv_c"],
             lp["wo_c"], lp["bo_c"], lp["ln3_g"], lp["ln3_b"],
             lp["w1"], lp["b1"], lp["w2"], lp["b2"]]

    if collect_attn:
        out_shape = (jax.ShapeDtypeStruct((B, T, D), jnp.float32),
                     jax.ShapeDtypeStruct((B, T, S), jnp.float32))
        out_specs = (pl.BlockSpec((None, T, D), lambda b: (b, 0, 0)),
                     pl.BlockSpec((None, T, S), lambda b: (b, 0, 0)))
    else:
        out_shape = jax.ShapeDtypeStruct((B, T, D), jnp.float32)
        out_specs = pl.BlockSpec((None, T, D), lambda b: (b, 0, 0))

    kernel = functools.partial(_decoder_layer_kernel, n_head=n_head,
                               has_in_proj=in_proj is not None,
                               collect_attn=collect_attn)
    est = (_arr_bytes(*args[3:])
           + 4 * (T * D_in + S * D + T * D + T * S + S) * 4
           + (T * 3 * D + S * 2 * D + 2 * n_head * (T * T + T * S) + T * FF) * 4
           + (8 << 20))
    return pl.pallas_call(
        kernel, out_shape=out_shape, grid=(B,),
        in_specs=in_specs, out_specs=out_specs,
        compiler_params=_cp(("parallel",), est),
    )(*args)


def output_head(x, attn, src_oov, params, vocab_size, max_num_oov):
    B, T, D = x.shape
    S = attn.shape[2]
    embt = params["embed_T_pad"]                       # (D, V_pad) bf16 (padded at init)
    v_pad = embt.shape[1]
    v_ext = vocab_size + max_num_oov
    assert v_ext <= v_pad, "raise cfg['oov_capacity']"
    tile_v = _pick_tile_v(v_pad)
    nv = v_pad // tile_v
    oov = src_oov.astype(jnp.int32).reshape(B, 1, S)   # lane-dense (1, S) rows
    wcat, bcat = params["w_out_pgen"], params["b_out_pgen"]

    kernel = functools.partial(_output_head_kernel,
                               vocab_size=vocab_size, tile_v=tile_v)
    est = (_arr_bytes(params["dec_ln_g"], params["dec_ln_b"], wcat, bcat)
           + 2 * D * tile_v * 2                          # double-buffered embt tile
           + 4 * (T * D + T * S + S) * 4 + 4 * T * tile_v * 4
           + 2 * (T * tile_v + tile_v * S) * 4
           + (8 << 20))
    out = pl.pallas_call(
        kernel,
        out_shape=jax.ShapeDtypeStruct((B, T, v_pad), jnp.float32),
        grid=(B, 2, nv),                                 # (batch, pass, vocab tile)
        in_specs=[
            pl.BlockSpec((None, T, D), lambda b, p, j: (b, 0, 0)),   # decoder hidden
            pl.BlockSpec((None, T, S), lambda b, p, j: (b, 0, 0)),   # cross attention
            pl.BlockSpec((None, 1, S), lambda b, p, j: (b, 0, 0)),   # src_oov (lane-dense)
            _rep(1, D), _rep(1, D),                                  # final decoder LN
            _rep(D, D + 1), _rep(1, D + 1),                          # output_fc + p_gen
            pl.BlockSpec((D, tile_v), lambda b, p, j: (0, j)),       # tied embed^T tile
        ],
        # pass 0 parks the output window on tile 0 (no garbage flushes);
        # pass 1 writes each lane-dense V tile exactly once.
        out_specs=pl.BlockSpec((None, T, tile_v), lambda b, p, j: (b, 0, p * j)),
        scratch_shapes=[pltpu.VMEM((T, D), jnp.bfloat16),   # projected hidden
                        pltpu.VMEM((T, 1), jnp.float32),    # p_gen
                        pltpu.VMEM((T, 1), jnp.float32),    # running max
                        pltpu.VMEM((T, 1), jnp.float32)],   # running sum-exp
        compiler_params=_cp(("parallel", "arbitrary", "arbitrary"), est),
    )(x, attn, oov, params["dec_ln_g"], params["dec_ln_b"], wcat, bcat, embt)
    return out[:, :, :v_ext]


# ---------------------------------------------------------------------------
# Encoder / decoder / forward (glue in JAX, compute in fused Pallas kernels)
# ---------------------------------------------------------------------------

def encode(params, cfg, src, src_mask3):
    B, S = src.shape
    D = cfg["d_model"]
    x = jnp.take(params["embed"], src, axis=0) * math.sqrt(D)
    x = x + params["pos_table"][1:S + 1][None]
    n_layers = len(params["enc_layers"])
    for li, lp in enumerate(params["enc_layers"]):
        x = encoder_layer(
            x, src_mask3, lp, cfg["n_head"],
            in_proj=(params["enc_in_w"], params["enc_in_b"]) if li == 0 else None,
            final_ln=(params["enc_ln_g"], params["enc_ln_b"])
            if li == n_layers - 1 else None)
    return x


def decode(params, cfg, tgt, memory, src_mask3, src_oov, max_num_oov):
    B, T = tgt.shape
    D = cfg["d_model"]
    x = jnp.take(params["embed"], tgt, axis=0) * math.sqrt(D)
    x = x + params["pos_table"][1:T + 1][None]
    n_layers = len(params["dec_layers"])
    attn = None
    for li, lp in enumerate(params["dec_layers"]):
        last = li == n_layers - 1
        res = decoder_layer(
            x, memory, src_mask3, lp, cfg["n_head"],
            in_proj=(params["dec_in_w"], params["dec_in_b"]) if li == 0 else None,
            collect_attn=last)
        if last:
            x, attn = res
        else:
            x = res
    final = output_head(x, attn, src_oov, params, cfg["vocab_size"], max_num_oov)
    return final, attn


def seq2seq_forward(params, cfg, src, src_lens, input_tgt, src_oov,
                    max_num_oov, src_mask):
    del src_lens  # masking carried by src_mask, as in the reference model
    B, S = src.shape
    src_mask3 = src_mask.reshape(B, 1, S).astype(jnp.float32)
    memory_bank = encode(params, cfg, src, src_mask3)
    decoder_dist_all, attention_dist_all = decode(
        params, cfg, input_tgt, memory_bank, src_mask3, src_oov, max_num_oov)
    return decoder_dist_all, attention_dist_all


# ---------------------------------------------------------------------------
# Parameter init (deterministic, PyTorch-default-style)
# ---------------------------------------------------------------------------

def sinusoid_table(n_position, d_hid, padding_idx):
    pos = jnp.arange(n_position, dtype=jnp.float32)[:, None]
    hid = jnp.arange(d_hid)[None, :]
    angle = pos / jnp.power(10000.0, (2 * (hid // 2)) / float(d_hid))
    table = jnp.where(hid % 2 == 0, jnp.sin(angle), jnp.cos(angle)).astype(jnp.float32)
    return table.at[padding_idx].set(0.0)


def init_params(key, cfg):
    V, D, FF = cfg["vocab_size"], cfg["d_model"], cfg["dim_ff"]
    keys = iter(jax.random.split(key, 512))

    def nk():
        return next(keys)

    def w_mat(fan_in, fan_out, dtype=jnp.bfloat16):
        bound = 1.0 / math.sqrt(fan_in)
        m = jax.random.uniform(nk(), (fan_in, fan_out), jnp.float32, -bound, bound)
        return m.astype(dtype)

    def b_vec(fan_in, fan_out):
        bound = 1.0 / math.sqrt(fan_in)
        return jax.random.uniform(nk(), (1, fan_out), jnp.float32, -bound, bound)

    def ln_pair():
        return jnp.ones((1, D), jnp.float32), jnp.zeros((1, D), jnp.float32)

    params = {}
    params["embed"] = jax.random.uniform(nk(), (V, D), jnp.float32, -0.1, 0.1)
    params["pos_table"] = sinusoid_table(3000, D, cfg["pad_idx"])

    # Tied output weights: pre-transposed, bf16, padded ONCE here to the OOV
    # capacity (lane-dense [D, V_pad], V_pad a multiple of 128 for clean tiles).
    v_pad = _round_up(V + cfg["oov_capacity"], 128)
    params["embed_T_pad"] = jnp.pad(
        params["embed"].T.astype(jnp.bfloat16), ((0, 0), (0, v_pad - V)))

    params["enc_in_w"], params["enc_in_b"] = w_mat(D, D), b_vec(D, D)
    enc_layers = []
    for _ in range(cfg["enc_layers"]):
        lp = {}
        lp["ln1_g"], lp["ln1_b"] = ln_pair()
        lp["wqkv"], lp["bqkv"] = w_mat(D, 3 * D), b_vec(D, 3 * D)
        lp["wo"], lp["bo"] = w_mat(D, D), b_vec(D, D)
        lp["ln2_g"], lp["ln2_b"] = ln_pair()
        lp["w1"], lp["b1"] = w_mat(D, FF), b_vec(D, FF)
        lp["w2"], lp["b2"] = w_mat(FF, D), b_vec(FF, D)
        enc_layers.append(lp)
    params["enc_layers"] = enc_layers
    params["enc_ln_g"], params["enc_ln_b"] = ln_pair()

    params["dec_in_w"], params["dec_in_b"] = w_mat(D, D), b_vec(D, D)
    dec_layers = []
    for _ in range(cfg["dec_layers"]):
        lp = {}
        lp["ln1_g"], lp["ln1_b"] = ln_pair()
        lp["wqkv_s"], lp["bqkv_s"] = w_mat(D, 3 * D), b_vec(D, 3 * D)
        lp["wo_s"], lp["bo_s"] = w_mat(D, D), b_vec(D, D)
        lp["ln2_g"], lp["ln2_b"] = ln_pair()
        lp["wq_c"], lp["bq_c"] = w_mat(D, D), b_vec(D, D)
        lp["wkv_c"], lp["bkv_c"] = w_mat(D, 2 * D), b_vec(D, 2 * D)
        lp["wo_c"], lp["bo_c"] = w_mat(D, D), b_vec(D, D)
        lp["ln3_g"], lp["ln3_b"] = ln_pair()
        lp["w1"], lp["b1"] = w_mat(D, FF), b_vec(D, FF)
        lp["w2"], lp["b2"] = w_mat(FF, D), b_vec(FF, D)
        dec_layers.append(lp)
    params["dec_layers"] = dec_layers
    params["dec_ln_g"], params["dec_ln_b"] = ln_pair()

    # output_fc with the p_gen column folded in: one (D, D+1) matmul in-kernel.
    w_out, b_out = w_mat(D, D), b_vec(D, D)
    w_pg, b_pg = w_mat(D, 1), b_vec(D, 1)
    params["w_out_pgen"] = jnp.concatenate([w_out, w_pg], axis=1)   # (D, D+1) bf16
    params["b_out_pgen"] = jnp.concatenate([b_out, b_pg], axis=1)   # (1, D+1) f32
    return params


# ---------------------------------------------------------------------------
# Main
# ---------------------------------------------------------------------------

if __name__ == "__main__":
    cfg = dict(
        vocab_size=50,
        d_model=128,       # word_vec_size (lane-dense feature dim)
        n_head=4,
        dim_ff=256,
        enc_layers=2,
        dec_layers=2,
        pad_idx=0,
        oov_capacity=32,   # OOV slots reserved in the padded tied-embedding
    )
    B, S, T = 2, 8, 6
    max_num_oov = 3

    key = jax.random.PRNGKey(0)
    kparam, ksrc, ktgt = jax.random.split(key, 3)

    params = init_params(kparam, cfg)

    src = jax.random.randint(ksrc, (B, S), 1, cfg["vocab_size"])
    input_tgt = jax.random.randint(ktgt, (B, T), 1, cfg["vocab_size"])
    src_lens = [S, S - 2]
    src_mask = (jnp.arange(S)[None, :] < jnp.array(src_lens)[:, None]).astype(jnp.float32)

    # src_oov: same as src but with a few positions pointing at extended (OOV) ids
    src_oov = src.at[0, 2].set(cfg["vocab_size"])          # oov #0
    src_oov = src_oov.at[0, 5].set(cfg["vocab_size"] + 1)  # oov #1
    src_oov = src_oov.at[1, 3].set(cfg["vocab_size"] + 2)  # oov #2

    decoder_dist, attention_dist = seq2seq_forward(
        params, cfg, src, src_lens, input_tgt, src_oov, max_num_oov, src_mask
    )
    jax.block_until_ready((decoder_dist, attention_dist))

    assert decoder_dist.shape == (B, T, cfg["vocab_size"] + max_num_oov)
    assert attention_dist.shape == (B, T, S)
    assert bool(jnp.all(jnp.isfinite(decoder_dist)))
    row_sums = jnp.sum(decoder_dist, axis=-1)
    assert bool(jnp.all(jnp.abs(row_sums - 1.0) < 1e-2)), row_sums
    print("KERNEL_OK")
</pallas_src>

<mosaic_0001>
module attributes {stable_mosaic.version = 11 : i64} {
  func.func @_k(%arg0: i32, %arg1: memref<8x128xf32, #tpu.memory_space<vmem>>, %arg2: memref<8x128xf32, #tpu.memory_space<vmem>>, %arg3: memref<8x128xf32, #tpu.memory_space<vmem>>) attributes {dimension_semantics = [#tpu.dimension_semantics<arbitrary>], iteration_bounds = array<i64: 2>, scalar_prefetch = 0 : i64, scratch_operands = 0 : i64, tpu.core_type = #tpu.core_type<tc>, window_params = [{pipeline_mode = #tpu.pipeline_mode<synchronous>, transform_indices = @transform_0, window_bounds = array<i64: 8, 128>}, {pipeline_mode = #tpu.pipeline_mode<synchronous>, transform_indices = @transform_1, window_bounds = array<i64: 8, 128>}, {pipeline_mode = #tpu.pipeline_mode<synchronous>, transform_indices = @transform_2, window_bounds = array<i64: 8, 128>}]} {
    %c0 = arith.constant 0 : index
    %c0_0 = arith.constant 0 : index
    %0 = vector.load %arg1[%c0, %c0_0] : memref<8x128xf32, #tpu.memory_space<vmem>>, vector<8x128xf32>
    %c0_1 = arith.constant 0 : index
    %c0_2 = arith.constant 0 : index
    %1 = vector.load %arg2[%c0_1, %c0_2] : memref<8x128xf32, #tpu.memory_space<vmem>>, vector<8x128xf32>
    %2 = arith.addf %0, %1 : vector<8x128xf32>
    %c0_3 = arith.constant 0 : index
    %c0_4 = arith.constant 0 : index
    %3 = vector.load %arg3[%c0_3, %c0_4] : memref<8x128xf32, #tpu.memory_space<vmem>>, vector<8x128xf32>
    tpu.vector_store %arg3[%c0_3, %c0_4], %2 {strides = array<i32>} : memref<8x128xf32, #tpu.memory_space<vmem>>, vector<8x128xf32>,
    return
  }
  func.func @transform_0(%arg0: i32) -> (i32, i32) {
    %c0_i32 = arith.constant 0 : i32
    %c0_i32_0 = arith.constant 0 : i32
    %c0_i32_1 = arith.constant 0 : i32
    return %c0_i32, %c0_i32_0 : i32, i32
  }
  func.func @transform_1(%arg0: i32) -> (i32, i32) {
    %c0_i32 = arith.constant 0 : i32
    %c0_i32_0 = arith.constant 0 : i32
    %c0_i32_1 = arith.constant 0 : i32
    return %c0_i32, %c0_i32_0 : i32, i32
  }
  func.func @transform_2(%arg0: i32) -> (i32, i32) {
    %c0_i32 = arith.constant 0 : i32
    %c0_i32_0 = arith.constant 0 : i32
    %c0_i32_1 = arith.constant 0 : i32
    return %c0_i32, %c0_i32_0 : i32, i32
  }
}

module attributes {stable_mosaic.version = 11 : i64} {
  func.func @_encoder_layer_kernel(%arg0: i32, %arg1: memref<1x8x128xf32, #tpu.memory_space<vmem>>, %arg2: memref<1x1x8xf32, #tpu.memory_space<vmem>>, %arg3: memref<128x128xbf16, #tpu.memory_space<vmem>>, %arg4: memref<1x128xf32, #tpu.memory_space<vmem>>, %arg5: memref<1x128xf32, #tpu.memory_space<vmem>>, %arg6: memref<1x128xf32, #tpu.memory_space<vmem>>, %arg7: memref<128x384xbf16, #tpu.memory_space<vmem>>, %arg8: memref<1x384xf32, #tpu.memory_space<vmem>>, %arg9: memref<128x128xbf16, #tpu.memory_space<vmem>>, %arg10: memref<1x128xf32, #tpu.memory_space<vmem>>, %arg11: memref<1x128xf32, #tpu.memory_space<vmem>>, %arg12: memref<1x128xf32, #tpu.memory_space<vmem>>, %arg13: memref<128x256xbf16, #tpu.memory_space<vmem>>, %arg14: memref<1x256xf32, #tpu.memory_space<vmem>>, %arg15: memref<256x128xbf16, #tpu.memory_space<vmem>>, %arg16: memref<1x128xf32, #tpu.memory_space<vmem>>, %arg17: memref<1x8x128xf32, #tpu.memory_space<vmem>>) attributes {dimension_semantics = [#tpu.dimension_semantics<parallel>], iteration_bounds = array<i64: 2>, scalar_prefetch = 0 : i64, scratch_operands = 0 : i64, tpu.core_type = #tpu.core_type<tc>, window_params = [{transform_indices = @transform_0, window_bounds = array<i64: 1, 8, 128>}, {transform_indices = @transform_1, window_bounds = array<i64: 1, 1, 8>}, {pipeline_mode = #tpu.pipeline_mode<synchronous>, transform_indices = @transform_2, window_bounds = array<i64: 128, 128>}, {pipeline_mode = #tpu.pipeline_mode<synchronous>, transform_indices = @transform_3, window_bounds = array<i64: 1, 128>}, {pipeline_mode = #tpu.pipeline_mode<synchronous>, transform_indices = @transform_4, window_bounds = array<i64: 1, 128>}, {pipeline_mode = #tpu.pipeline_mode<synchronous>, transform_indices = @transform_5, window_bounds = array<i64: 1, 128>}, {pipeline_mode = #tpu.pipeline_mode<synchronous>, transform_indices = @transform_6, window_bounds = array<i64: 128, 384>}, {pipeline_mode = #tpu.pipeline_mode<synchronous>, transform_indices = @transform_7, window_bounds = array<i64: 1, 384>}, {pipeline_mode = #tpu.pipeline_mode<synchronous>, transform_indices = @transform_8, window_bounds = array<i64: 128, 128>}, {pipeline_mode = #tpu.pipeline_mode<synchronous>, transform_indices = @transform_9, window_bounds = array<i64: 1, 128>}, {pipeline_mode = #tpu.pipeline_mode<synchronous>, transform_indices = @transform_10, window_bounds = array<i64: 1, 128>}, {pipeline_mode = #tpu.pipeline_mode<synchronous>, transform_indices = @transform_11, window_bounds = array<i64: 1, 128>}, {pipeline_mode = #tpu.pipeline_mode<synchronous>, transform_indices = @transform_12, window_bounds = array<i64: 128, 256>}, {pipeline_mode = #tpu.pipeline_mode<synchronous>, transform_indices = @transform_13, window_bounds = array<i64: 1, 256>}, {pipeline_mode = #tpu.pipeline_mode<synchronous>, transform_indices = @transform_14, window_bounds = array<i64: 256, 128>}, {pipeline_mode = #tpu.pipeline_mode<synchronous>, transform_indices = @transform_15, window_bounds = array<i64: 1, 128>}, {transform_indices = @transform_16, window_bounds = array<i64: 1, 8, 128>}]} {
    %c0 = arith.constant 0 : index
    %c0_0 = arith.constant 0 : index
    %c0_1 = arith.constant 0 : index
    %0 = vector.load %arg1[%c0, %c0_0, %c0_1] : memref<1x8x128xf32, #tpu.memory_space<vmem>>, vector<1x8x128xf32>
    %1 = vector.shape_cast %0 : vector<1x8x128xf32> to vector<8x128xf32>
    %c0_2 = arith.constant 0 : index
    %c0_3 = arith.constant 0 : index
    %2 = vector.load %arg3[%c0_2, %c0_3] : memref<128x128xbf16, #tpu.memory_space<vmem>>, vector<128x128xbf16>
    %3 = arith.truncf %1 : vector<8x128xf32> to vector<8x128xbf16>
    %cst = arith.constant dense<0.000000e+00> : vector<8x128xf32>
    %4 = tpu.matmul %3, %2, %cst {dimension_numbers = #tpu.dot_dimension_numbers<[1], [0], [0], [1], [0, 0, 1, 1], [], []>} : vector<8x128xbf16>, vector<128x128xbf16>, vector<8x128xf32> -> vector<8x128xf32>
    %c0_4 = arith.constant 0 : index
    %c0_5 = arith.constant 0 : index
    %5 = vector.load %arg4[%c0_4, %c0_5] : memref<1x128xf32, #tpu.memory_space<vmem>>, vector<1x128xf32>
    %6 = vector.broadcast %5 : vector<1x128xf32> to vector<8x128xf32>
    %7 = arith.addf %4, %6 : vector<8x128xf32>
    %c0_6 = arith.constant 0 : index
    %c0_7 = arith.constant 0 : index
    %8 = vector.load %arg5[%c0_6, %c0_7] : memref<1x128xf32, #tpu.memory_space<vmem>>, vector<1x128xf32>
    %c0_8 = arith.constant 0 : index
    %c0_9 = arith.constant 0 : index
    %9 = vector.load %arg6[%c0_8, %c0_9] : memref<1x128xf32, #tpu.memory_space<vmem>>, vector<1x128xf32>
    %cst_10 = arith.constant dense<0.000000e+00> : vector<8xf32>
    %10 = vector.multi_reduction <add>, %7, %cst_10 [1] : vector<8x128xf32> to vector<8xf32>
    %11 = vector.shape_cast %10 : vector<8xf32> to vector<8x1xf32>
    %cst_11 = arith.constant 1.280000e+02 : f32
    %12 = vector.broadcast %cst_11 : f32 to vector<8x1xf32>
    %13 = arith.divf %11, %12 : vector<8x1xf32>
    %14 = vector.broadcast %13 : vector<8x1xf32> to vector<8x128xf32>
    %15 = arith.subf %7, %14 : vector<8x128xf32>
    %16 = arith.mulf %15, %15 : vector<8x128xf32>
    %cst_12 = arith.constant dense<0.000000e+00> : vector<8xf32>
    %17 = vector.multi_reduction <add>, %16, %cst_12 [1] : vector<8x128xf32> to vector<8xf32>
    %18 = vector.shape_cast %17 : vector<8xf32> to vector<8x1xf32>
    %cst_13 = arith.constant 1.280000e+02 : f32
    %19 = vector.broadcast %cst_13 : f32 to vector<8x1xf32>
    %20 = arith.divf %18, %19 : vector<8x1xf32>
    %21 = vector.broadcast %13 : vector<8x1xf32> to vector<8x128xf32>
    %22 = arith.subf %7, %21 : vector<8x128xf32>
    %cst_14 = arith.constant 9.99999974E-6 : f32
    %23 = vector.broadcast %cst_14 : f32 to vector<8x1xf32>
    %24 = arith.addf %20, %23 : vector<8x1xf32>
    %25 = math.rsqrt %24 : vector<8x1xf32>
    %26 = vector.broadcast %25 : vector<8x1xf32> to vector<8x128xf32>
    %27 = arith.mulf %22, %26 : vector<8x128xf32>
    %28 = vector.broadcast %8 : vector<1x128xf32> to vector<8x128xf32>
    %29 = arith.mulf %27, %28 : vector<8x128xf32>
    %30 = vector.broadcast %9 : vector<1x128xf32> to vector<8x128xf32>
    %31 = arith.addf %29, %30 : vector<8x128xf32>
    %c0_15 = arith.constant 0 : index
    %c0_16 = arith.constant 0 : index
    %32 = vector.load %arg7[%c0_15, %c0_16] : memref<128x384xbf16, #tpu.memory_space<vmem>>, vector<128x384xbf16>
    %33 = arith.truncf %31 : vector<8x128xf32> to vector<8x128xbf16>
    %cst_17 = arith.constant dense<0.000000e+00> : vector<8x384xf32>
    %34 = tpu.matmul %33, %32, %cst_17 {dimension_numbers = #tpu.dot_dimension_numbers<[1], [0], [0], [1], [0, 0, 1, 1], [], []>} : vector<8x128xbf16>, vector<128x384xbf16>, vector<8x384xf32> -> vector<8x384xf32>
    %c0_18 = arith.constant 0 : index
    %c0_19 = arith.constant 0 : index
    %35 = vector.load %arg8[%c0_18, %c0_19] : memref<1x384xf32, #tpu.memory_space<vmem>>, vector<1x384xf32>
    %36 = vector.broadcast %35 : vector<1x384xf32> to vector<8x384xf32>
    %37 = arith.addf %34, %36 : vector<8x384xf32>
    %c0_20 = arith.constant 0 : index
    %c0_21 = arith.constant 0 : index
    %c0_22 = arith.constant 0 : index
    %38 = vector.load %arg2[%c0_20, %c0_21, %c0_22] : memref<1x1x8xf32, #tpu.memory_space<vmem>>, vector<1x1x8xf32>
    %39 = vector.shape_cast %38 : vector<1x1x8xf32> to vector<1x8xf32>
    %cst_23 = arith.constant 1.000000e+00 : f32
    %40 = vector.broadcast %cst_23 : f32 to vector<1x8xf32>
    %41 = arith.subf %40, %39 : vector<1x8xf32>
    %cst_24 = arith.constant -1.000000e+09 : f32
    %42 = vector.broadcast %cst_24 : f32 to vector<1x8xf32>
    %43 = arith.mulf %41, %42 : vector<1x8xf32>
    %44 = vector.shape_cast %43 : vector<1x8xf32> to vector<1x1x8xf32>
    %45 = vector.extract_strided_slice %37 {offsets = [0, 0], sizes = [8, 128], strides = [1, 1]} : vector<8x384xf32> to vector<8x128xf32>
    %46 = vector.extract_strided_slice %37 {offsets = [0, 128], sizes = [8, 128], strides = [1, 1]} : vector<8x384xf32> to vector<8x128xf32>
    %47 = vector.extract_strided_slice %37 {offsets = [0, 256], sizes = [8, 128], strides = [1, 1]} : vector<8x384xf32> to vector<8x128xf32>
    %48 = vector.extract_strided_slice %45 {offsets = [0, 0], sizes = [8, 32], strides = [1, 1]} : vector<8x128xf32> to vector<8x32xf32>
    %cst_25 = arith.constant 0.176776692 : f32
    %49 = vector.broadcast %cst_25 : f32 to vector<8x32xf32>
    %50 = arith.mulf %48, %49 : vector<8x32xf32>
    %51 = arith.truncf %50 : vector<8x32xf32> to vector<8x32xbf16>
    %52 = vector.extract_strided_slice %45 {offsets = [0, 32], sizes = [8, 32], strides = [1, 1]} : vector<8x128xf32> to vector<8x32xf32>
    %cst_26 = arith.constant 0.176776692 : f32
    %53 = vector.broadcast %cst_26 : f32 to vector<8x32xf32>
    %54 = arith.mulf %52, %53 : vector<8x32xf32>
    %55 = arith.truncf %54 : vector<8x32xf32> to vector<8x32xbf16>
    %56 = vector.extract_strided_slice %45 {offsets = [0, 64], sizes = [8, 32], strides = [1, 1]} : vector<8x128xf32> to vector<8x32xf32>
    %cst_27 = arith.constant 0.176776692 : f32
    %57 = vector.broadcast %cst_27 : f32 to vector<8x32xf32>
    %58 = arith.mulf %56, %57 : vector<8x32xf32>
    %59 = arith.truncf %58 : vector<8x32xf32> to vector<8x32xbf16>
    %60 = vector.extract_strided_slice %45 {offsets = [0, 96], sizes = [8, 32], strides = [1, 1]} : vector<8x128xf32> to vector<8x32xf32>
    %cst_28 = arith.constant 0.176776692 : f32
    %61 = vector.broadcast %cst_28 : f32 to vector<8x32xf32>
    %62 = arith.mulf %60, %61 : vector<8x32xf32>
    %63 = arith.truncf %62 : vector<8x32xf32> to vector<8x32xbf16>
    %64 = vector.shape_cast %51 : vector<8x32xbf16> to vector<1x8x32xbf16>
    %65 = vector.shape_cast %55 : vector<8x32xbf16> to vector<1x8x32xbf16>
    %66 = vector.shape_cast %59 : vector<8x32xbf16> to vector<1x8x32xbf16>
    %67 = vector.shape_cast %63 : vector<8x32xbf16> to vector<1x8x32xbf16>
    %68 = tpu.concatenate %64, %65, %66, %67 in 0 : vector<1x8x32xbf16>, vector<1x8x32xbf16>, vector<1x8x32xbf16>, vector<1x8x32xbf16> -> vector<4x8x32xbf16>
    %69 = vector.extract_strided_slice %46 {offsets = [0, 0], sizes = [8, 32], strides = [1, 1]} : vector<8x128xf32> to vector<8x32xf32>
    %70 = arith.truncf %69 : vector<8x32xf32> to vector<8x32xbf16>
    %71 = vector.extract_strided_slice %46 {offsets = [0, 32], sizes = [8, 32], strides = [1, 1]} : vector<8x128xf32> to vector<8x32xf32>
    %72 = arith.truncf %71 : vector<8x32xf32> to vector<8x32xbf16>
    %73 = vector.extract_strided_slice %46 {offsets = [0, 64], sizes = [8, 32], strides = [1, 1]} : vector<8x128xf32> to vector<8x32xf32>
    %74 = arith.truncf %73 : vector<8x32xf32> to vector<8x32xbf16>
    %75 = vector.extract_strided_slice %46 {offsets = [0, 96], sizes = [8, 32], strides = [1, 1]} : vector<8x128xf32> to vector<8x32xf32>
    %76 = arith.truncf %75 : vector<8x32xf32> to vector<8x32xbf16>
    %77 = vector.shape_cast %70 : vector<8x32xbf16> to vector<1x8x32xbf16>
    %78 = vector.shape_cast %72 : vector<8x32xbf16> to vector<1x8x32xbf16>
    %79 = vector.shape_cast %74 : vector<8x32xbf16> to vector<1x8x32xbf16>
    %80 = vector.shape_cast %76 : vector<8x32xbf16> to vector<1x8x32xbf16>
    %81 = tpu.concatenate %77, %78, %79, %80 in 0 : vector<1x8x32xbf16>, vector<1x8x32xbf16>, vector<1x8x32xbf16>, vector<1x8x32xbf16> -> vector<4x8x32xbf16>
    %82 = vector.extract_strided_slice %47 {offsets = [0, 0], sizes = [8, 32], strides = [1, 1]} : vector<8x128xf32> to vector<8x32xf32>
    %83 = arith.truncf %82 : vector<8x32xf32> to vector<8x32xbf16>
    %84 = vector.extract_strided_slice %47 {offsets = [0, 32], sizes = [8, 32], strides = [1, 1]} : vector<8x128xf32> to vector<8x32xf32>
    %85 = arith.truncf %84 : vector<8x32xf32> to vector<8x32xbf16>
    %86 = vector.extract_strided_slice %47 {offsets = [0, 64], sizes = [8, 32], strides = [1, 1]} : vector<8x128xf32> to vector<8x32xf32>
    %87 = arith.truncf %86 : vector<8x32xf32> to vector<8x32xbf16>
    %88 = vector.extract_strided_slice %47 {offsets = [0, 96], sizes = [8, 32], strides = [1, 1]} : vector<8x128xf32> to vector<8x32xf32>
    %89 = arith.truncf %88 : vector<8x32xf32> to vector<8x32xbf16>
    %90 = vector.shape_cast %83 : vector<8x32xbf16> to vector<1x8x32xbf16>
    %91 = vector.shape_cast %85 : vector<8x32xbf16> to vector<1x8x32xbf16>
    %92 = vector.shape_cast %87 : vector<8x32xbf16> to vector<1x8x32xbf16>
    %93 = vector.shape_cast %89 : vector<8x32xbf16> to vector<1x8x32xbf16>
    %94 = tpu.concatenate %90, %91, %92, %93 in 0 : vector<1x8x32xbf16>, vector<1x8x32xbf16>, vector<1x8x32xbf16>, vector<1x8x32xbf16> -> vector<4x8x32xbf16>
    "tpu.trace_start"() <{level = 10 : i32, message = "hqd,hkd->hqk"}> : () -> ()
    %cst_29 = arith.constant dense<0.000000e+00> : vector<4x8x8xf32>
    %95 = tpu.matmul %68, %81, %cst_29 {dimension_numbers = #tpu.dot_dimension_numbers<[2], [2], [1], [1], [0, 0, 0, 1, 1, 1], [0], [0]>} : vector<4x8x32xbf16>, vector<4x8x32xbf16>, vector<4x8x8xf32> -> vector<4x8x8xf32>
    "tpu.trace_stop"() : () -> ()
    %96 = vector.broadcast %44 : vector<1x1x8xf32> to vector<4x8x8xf32>
    %97 = arith.addf %95, %96 : vector<4x8x8xf32>
    %cst_30 = arith.constant dense<0xFF800000> : vector<4x8xf32>
    %98 = vector.multi_reduction <maximumf>, %97, %cst_30 [2] : vector<4x8x8xf32> to vector<4x8xf32>
    %99 = vector.shape_cast %98 : vector<4x8xf32> to vector<4x8x1xf32>
    %100 = vector.broadcast %99 : vector<4x8x1xf32> to vector<4x8x8xf32>
    %101 = arith.subf %97, %100 : vector<4x8x8xf32>
    %102 = math.exp %101 : vector<4x8x8xf32>
    %cst_31 = arith.constant dense<0.000000e+00> : vector<4x8xf32>
    %103 = vector.multi_reduction <add>, %102, %cst_31 [2] : vector<4x8x8xf32> to vector<4x8xf32>
    %104 = vector.shape_cast %103 : vector<4x8xf32> to vector<4x8x1xf32>
    %105 = tpu.reciprocal %104 {approx = true} : vector<4x8x1xf32> -> vector<4x8x1xf32>
    %106 = vector.broadcast %105 : vector<4x8x1xf32> to vector<4x8x8xf32>
    %107 = arith.mulf %102, %106 : vector<4x8x8xf32>
    %108 = arith.truncf %107 : vector<4x8x8xf32> to vector<4x8x8xbf16>
    "tpu.trace_start"() <{level = 10 : i32, message = "hqk,hkd->hqd"}> : () -> ()
    %cst_32 = arith.constant dense<0.000000e+00> : vector<4x8x32xf32>
    %109 = tpu.matmul %108, %94, %cst_32 {dimension_numbers = #tpu.dot_dimension_numbers<[2], [1], [1], [2], [0, 0, 0, 1, 1, 2], [0], [0]>} : vector<4x8x8xbf16>, vector<4x8x32xbf16>, vector<4x8x32xf32> -> vector<4x8x32xf32>
    "tpu.trace_stop"() : () -> ()
    %110 = vector.extract_strided_slice %109 {offsets = [0, 0, 0], sizes = [1, 8, 32], strides = [1, 1, 1]} : vector<4x8x32xf32> to vector<1x8x32xf32>
    %111 = vector.shape_cast %110 : vector<1x8x32xf32> to vector<8x32xf32>
    %112 = vector.extract_strided_slice %109 {offsets = [1, 0, 0], sizes = [1, 8, 32], strides = [1, 1, 1]} : vector<4x8x32xf32> to vector<1x8x32xf32>
    %113 = vector.shape_cast %112 : vector<1x8x32xf32> to vector<8x32xf32>
    %114 = vector.extract_strided_slice %109 {offsets = [2, 0, 0], sizes = [1, 8, 32], strides = [1, 1, 1]} : vector<4x8x32xf32> to vector<1x8x32xf32>
    %115 = vector.shape_cast %114 : vector<1x8x32xf32> to vector<8x32xf32>
    %116 = vector.extract_strided_slice %109 {offsets = [3, 0, 0], sizes = [1, 8, 32], strides = [1, 1, 1]} : vector<4x8x32xf32> to vector<1x8x32xf32>
    %117 = vector.shape_cast %116 : vector<1x8x32xf32> to vector<8x32xf32>
    %118 = tpu.concatenate %111, %113, %115, %117 in 1 : vector<8x32xf32>, vector<8x32xf32>, vector<8x32xf32>, vector<8x32xf32> -> vector<8x128xf32>
    %c0_33 = arith.constant 0 : index
    %c0_34 = arith.constant 0 : index
    %119 = vector.load %arg9[%c0_33, %c0_34] : memref<128x128xbf16, #tpu.memory_space<vmem>>, vector<128x128xbf16>
    %120 = arith.truncf %118 : vector<8x128xf32> to vector<8x128xbf16>
    %cst_35 = arith.constant dense<0.000000e+00> : vector<8x128xf32>
    %121 = tpu.matmul %120, %119, %cst_35 {dimension_numbers = #tpu.dot_dimension_numbers<[1], [0], [0], [1], [0, 0, 1, 1], [], []>} : vector<8x128xbf16>, vector<128x128xbf16>, vector<8x128xf32> -> vector<8x128xf32>
    %122 = arith.addf %7, %121 : vector<8x128xf32>
    %c0_36 = arith.constant 0 : index
    %c0_37 = arith.constant 0 : index
    %123 = vector.load %arg10[%c0_36, %c0_37] : memref<1x128xf32, #tpu.memory_space<vmem>>, vector<1x128xf32>
    %124 = vector.broadcast %123 : vector<1x128xf32> to vector<8x128xf32>
    %125 = arith.addf %122, %124 : vector<8x128xf32>
    %c0_38 = arith.constant 0 : index
    %c0_39 = arith.constant 0 : index
    %126 = vector.load %arg11[%c0_38, %c0_39] : memref<1x128xf32, #tpu.memory_space<vmem>>, vector<1x128xf32>
    %c0_40 = arith.constant 0 : index
    %c0_41 = arith.constant 0 : index
    %127 = vector.load %arg12[%c0_40, %c0_41] : memref<1x128xf32, #tpu.memory_space<vmem>>, vector<1x128xf32>
    %cst_42 = arith.constant dense<0.000000e+00> : vector<8xf32>
    %128 = vector.multi_reduction <add>, %125, %cst_42 [1] : vector<8x128xf32> to vector<8xf32>
    %129 = vector.shape_cast %128 : vector<8xf32> to vector<8x1xf32>
    %cst_43 = arith.constant 1.280000e+02 : f32
    %130 = vector.broadcast %cst_43 : f32 to vector<8x1xf32>
    %131 = arith.divf %129, %130 : vector<8x1xf32>
    %132 = vector.broadcast %131 : vector<8x1xf32> to vector<8x128xf32>
    %133 = arith.subf %125, %132 : vector<8x128xf32>
    %134 = arith.mulf %133, %133 : vector<8x128xf32>
    %cst_44 = arith.constant dense<0.000000e+00> : vector<8xf32>
    %135 = vector.multi_reduction <add>, %134, %cst_44 [1] : vector<8x128xf32> to vector<8xf32>
    %136 = vector.shape_cast %135 : vector<8xf32> to vector<8x1xf32>
    %cst_45 = arith.constant 1.280000e+02 : f32
    %137 = vector.broadcast %cst_45 : f32 to vector<8x1xf32>
    %138 = arith.divf %136, %137 : vector<8x1xf32>
    %139 = vector.broadcast %131 : vector<8x1xf32> to vector<8x128xf32>
    %140 = arith.subf %125, %139 : vector<8x128xf32>
    %cst_46 = arith.constant 9.99999974E-6 : f32
    %141 = vector.broadcast %cst_46 : f32 to vector<8x1xf32>
    %142 = arith.addf %138, %141 : vector<8x1xf32>
    %143 = math.rsqrt %142 : vector<8x1xf32>
    %144 = vector.broadcast %143 : vector<8x1xf32> to vector<8x128xf32>
    %145 = arith.mulf %140, %144 : vector<8x128xf32>
    %146 = vector.broadcast %126 : vector<1x128xf32> to vector<8x128xf32>
    %147 = arith.mulf %145, %146 : vector<8x128xf32>
    %148 = vector.broadcast %127 : vector<1x128xf32> to vector<8x128xf32>
    %149 = arith.addf %147, %148 : vector<8x128xf32>
    %c0_47 = arith.constant 0 : index
    %c0_48 = arith.constant 0 : index
    %150 = vector.load %arg13[%c0_47, %c0_48] : memref<128x256xbf16, #tpu.memory_space<vmem>>, vector<128x256xbf16>
    %151 = arith.truncf %149 : vector<8x128xf32> to vector<8x128xbf16>
    %cst_49 = arith.constant dense<0.000000e+00> : vector<8x256xf32>
    %152 = tpu.matmul %151, %150, %cst_49 {dimension_numbers = #tpu.dot_dimension_numbers<[1], [0], [0], [1], [0, 0, 1, 1], [], []>} : vector<8x128xbf16>, vector<128x256xbf16>, vector<8x256xf32> -> vector<8x256xf32>
    %c0_50 = arith.constant 0 : index
    %c0_51 = arith.constant 0 : index
    %153 = vector.load %arg14[%c0_50, %c0_51] : memref<1x256xf32, #tpu.memory_space<vmem>>, vector<1x256xf32>
    %154 = vector.broadcast %153 : vector<1x256xf32> to vector<8x256xf32>
    %155 = arith.addf %152, %154 : vector<8x256xf32>
    %cst_52 = arith.constant 0.000000e+00 : f32
    %156 = vector.broadcast %cst_52 : f32 to vector<8x256xf32>
    %157 = arith.maximumf %155, %156 : vector<8x256xf32>
    %c0_53 = arith.constant 0 : index
    %c0_54 = arith.constant 0 : index
    %158 = vector.load %arg15[%c0_53, %c0_54] : memref<256x128xbf16, #tpu.memory_space<vmem>>, vector<256x128xbf16>
    %159 = arith.truncf %157 : vector<8x256xf32> to vector<8x256xbf16>
    %cst_55 = arith.constant dense<0.000000e+00> : vector<8x128xf32>
    %160 = tpu.matmul %159, %158, %cst_55 {dimension_numbers = #tpu.dot_dimension_numbers<[1], [0], [0], [1], [0, 0, 1, 1], [], []>} : vector<8x256xbf16>, vector<256x128xbf16>, vector<8x128xf32> -> vector<8x128xf32>
    %161 = arith.addf %125, %160 : vector<8x128xf32>
    %c0_56 = arith.constant 0 : index
    %c0_57 = arith.constant 0 : index
    %162 = vector.load %arg16[%c0_56, %c0_57] : memref<1x128xf32, #tpu.memory_space<vmem>>, vector<1x128xf32>
    %163 = vector.broadcast %162 : vector<1x128xf32> to vector<8x128xf32>
    %164 = arith.addf %161, %163 : vector<8x128xf32>
    %c0_58 = arith.constant 0 : index
    %c0_59 = arith.constant 0 : index
    %c0_60 = arith.constant 0 : index
    %165 = vector.load %arg17[%c0_58, %c0_59, %c0_60] : memref<1x8x128xf32, #tpu.memory_space<vmem>>, vector<1x8x128xf32>
    %166 = vector.shape_cast %165 : vector<1x8x128xf32> to vector<8x128xf32>
    %167 = vector.shape_cast %164 : vector<8x128xf32> to vector<1x8x128xf32>
    tpu.vector_store %arg17[%c0_58, %c0_59, %c0_60], %167 {strides = array<i32>} : memref<1x8x128xf32, #tpu.memory_space<vmem>>, vector<1x8x128xf32>,
    return
  }
  func.func @transform_0(%arg0: i32) -> (i32, i32, i32) {
    %c0_i32 = arith.constant 0 : i32
    %c0_i32_0 = arith.constant 0 : i32
    %c0_i32_1 = arith.constant 0 : i32
    return %arg0, %c0_i32, %c0_i32_0 : i32, i32, i32
  }
  func.func @transform_1(%arg0: i32) -> (i32, i32, i32) {
    %c0_i32 = arith.constant 0 : i32
    %c0_i32_0 = arith.constant 0 : i32
    %c0_i32_1 = arith.constant 0 : i32
    return %arg0, %c0_i32, %c0_i32_0 : i32, i32, i32
  }
  func.func @transform_2(%arg0: i32) -> (i32, i32) {
    %c0_i32 = arith.constant 0 : i32
    %c0_i32_0 = arith.constant 0 : i32
    %c0_i32_1 = arith.constant 0 : i32
    return %c0_i32, %c0_i32_0 : i32, i32
  }
  func.func @transform_3(%arg0: i32) -> (i32, i32) {
    %c0_i32 = arith.constant 0 : i32
    %c0_i32_0 = arith.constant 0 : i32
    %c0_i32_1 = arith.constant 0 : i32
    return %c0_i32, %c0_i32_0 : i32, i32
  }
  func.func @transform_4(%arg0: i32) -> (i32, i32) {
    %c0_i32 = arith.constant 0 : i32
    %c0_i32_0 = arith.constant 0 : i32
    %c0_i32_1 = arith.constant 0 : i32
    return %c0_i32, %c0_i32_0 : i32, i32
  }
  func.func @transform_5(%arg0: i32) -> (i32, i32) {
    %c0_i32 = arith.constant 0 : i32
    %c0_i32_0 = arith.constant 0 : i32
    %c0_i32_1 = arith.constant 0 : i32
    return %c0_i32, %c0_i32_0 : i32, i32
  }
  func.func @transform_6(%arg0: i32) -> (i32, i32) {
    %c0_i32 = arith.constant 0 : i32
    %c0_i32_0 = arith.constant 0 : i32
    %c0_i32_1 = arith.constant 0 : i32
    return %c0_i32, %c0_i32_0 : i32, i32
  }
  func.func @transform_7(%arg0: i32) -> (i32, i32) {
    %c0_i32 = arith.constant 0 : i32
    %c0_i32_0 = arith.constant 0 : i32
    %c0_i32_1 = arith.constant 0 : i32
    return %c0_i32, %c0_i32_0 : i32, i32
  }
  func.func @transform_8(%arg0: i32) -> (i32, i32) {
    %c0_i32 = arith.constant 0 : i32
    %c0_i32_0 = arith.constant 0 : i32
    %c0_i32_1 = arith.constant 0 : i32
    return %c0_i32, %c0_i32_0 : i32, i32
  }
  func.func @transform_9(%arg0: i32) -> (i32, i32) {
    %c0_i32 = arith.constant 0 : i32
    %c0_i32_0 = arith.constant 0 : i32
    %c0_i32_1 = arith.constant 0 : i32
    return %c0_i32, %c0_i32_0 : i32, i32
  }
  func.func @transform_10(%arg0: i32) -> (i32, i32) {
    %c0_i32 = arith.constant 0 : i32
    %c0_i32_0 = arith.constant 0 : i32
    %c0_i32_1 = arith.constant 0 : i32
    return %c0_i32, %c0_i32_0 : i32, i32
  }
  func.func @transform_11(%arg0: i32) -> (i32, i32) {
    %c0_i32 = arith.constant 0 : i32
    %c0_i32_0 = arith.constant 0 : i32
    %c0_i32_1 = arith.constant 0 : i32
    return %c0_i32, %c0_i32_0 : i32, i32
  }
  func.func @transform_12(%arg0: i32) -> (i32, i32) {
    %c0_i32 = arith.constant 0 : i32
    %c0_i32_0 = arith.constant 0 : i32
    %c0_i32_1 = arith.constant 0 : i32
    return %c0_i32, %c0_i32_0 : i32, i32
  }
  func.func @transform_13(%arg0: i32) -> (i32, i32) {
    %c0_i32 = arith.constant 0 : i32
    %c0_i32_0 = arith.constant 0 : i32
    %c0_i32_1 = arith.constant 0 : i32
    return %c0_i32, %c0_i32_0 : i32, i32
  }
  func.func @transform_14(%arg0: i32) -> (i32, i32) {
    %c0_i32 = arith.constant 0 : i32
    %c0_i32_0 = arith.constant 0 : i32
    %c0_i32_1 = arith.constant 0 : i32
    return %c0_i32, %c0_i32_0 : i32, i32
  }
  func.func @transform_15(%arg0: i32) -> (i32, i32) {
    %c0_i32 = arith.constant 0 : i32
    %c0_i32_0 = arith.constant 0 : i32
    %c0_i32_1 = arith.constant 0 : i32
    return %c0_i32, %c0_i32_0 : i32, i32
  }
  func.func @transform_16(%arg0: i32) -> (i32, i32, i32) {
    %c0_i32 = arith.constant 0 : i32
    %c0_i32_0 = arith.constant 0 : i32
    %c0_i32_1 = arith.constant 0 : i32
    return %arg0, %c0_i32, %c0_i32_0 : i32, i32, i32
  }
}

</mosaic_0001>

<bundles_post_ra>
// kernel: tpu_custom_call.1
= control target key start
LH: loop header
LB: loop body
LE: loop exit
PB: predicated region body
PF: predicated region fallthrough
CT: control target
= control target key end

     0   :  { %7 = vsyncpa [#allocation3], 0  ;;  %s431_s0 = inlined_call_operand.hbm [shape: f32[8,128], index: 0, kind: input, shape index: {}]   ;;  %s432_s1 = inlined_call_operand.hbm [shape: f32[8,128], index: 1, kind: input, shape index: {}]   ;;  %s433_s2 = inlined_call_operand.hbm [shape: f32[8,128], index: 2, kind: output, shape index: {}]  }
   0x1   :  { %8 = vsyncpa [#allocation6], 0 }
   0x2   :  { %9 = vsyncpa [#allocation4], 0  ;;  %s357_s9 = smov 0  }
   0x3 LB: > { %s196_s10 = sadd.s32 4294967295, %s337_s9   ;;  %p197_p0 = scmp.ge.s32.totalorder %s337_s9, 1  ;;  %s337_s9 = sphi %s357_s9, %s15_s9  }
   0x4   : > { %p83_p1 = scmp.lt.s32.totalorder %s337_s9, 3  ;;  %p367_p2 = scmp.eq.s32.totalorder %s196_s10, 0 }
   0x5   : > { %s339_s13 = smov [#allocation2]   ;;  %s340_s15 = smov [#allocation5]  }
   0x6   : > { %s437_s11 = scalar_select %p367_p2, 1, 0 }
   0x7   : > { %p371_p3 = pnand %p197_p0, %p83_p1  ;;  %s96_s14 = sshll.u32 %s339_s13, 4  ;;  %s97_s14 = int_to_ptr.vmem [resolvable:$true] %s96_s14 }
   0x8   : > { %s107_s16 = sshll.u32 %s340_s15, 4  ;;  %s254_s18 = scalar_lea.vmem %s97_s14, 128  ;;  %s108_s16 = int_to_ptr.vmem [resolvable:$true] %s107_s16 }
   0x9   : > { %s438_s12 = scalar_select %p371_p3, 1, 0 }
   0xa   : > { %p219_p4 = pneg %p371_p3  ;;  %p255_p7 = scmp.ne.s32.totalorder %s97_s14, %s254_s18 }
   0xb   : > { %p262_p10 = scmp.lt.s32.totalorder %s97_s14, %s97_s14  ;;  %p263_p11 = scmp.lt.s32.totalorder %s254_s18, %s254_s18 }
   0xc   : > { %p379_p5 = pnand %p367_p2, %p219_p4 }
   0xd   : > { %p264_p12 = por %p263_p11, %p262_p10 }
   0xe   : > { %p245_p6 = pneg %p379_p5 }
  0x10   : > { %p257_p8 = pnand %p255_p7, %p245_p6 }
  0x12   : > { %p258_p9 = pneg %p257_p8 }
  0x14   : > { %p265_p13 = pnand %p264_p12, %p258_p9 }
  0x16   : > { %268 = shalt.err (!%p265_p13)
}
  0x17   : > { %222 = dma.hbm_to_vmem [thread:$0]  (!%p379_p5), %s431_s0, 128, %s97_s14, [#allocation3]  }
  0x18   : > { %s280_s21 = scalar_lea.vmem %s108_s16, 128  ;;  %p288_p7 = scmp.lt.s32.totalorder %s108_s16, %s108_s16 }
  0x19   : > { %p281_p0 = scmp.ne.s32.totalorder %s108_s16, %s280_s21  ;;  %p289_p8 = scmp.lt.s32.totalorder %s280_s21, %s280_s21 }
  0x1b   : > { %p283_p1 = pnand %p281_p0, %p245_p6  ;;  %p290_p2 = por %p289_p8, %p288_p7 }
  0x1d   : > { %p284_p4 = pneg %p283_p1 }
  0x1f   : > { %p291_p3 = pnand %p290_p2, %p284_p4 }
  0x21   : > { %294 = shalt.err (!%p291_p3)
}
  0x22   : > { %225 = dma.hbm_to_vmem [thread:$0]  (!%p379_p5), %s432_s1, 128, %s108_s16, [#allocation6]  }
  0x23   : > { %p440_p9 = scmp.ne.s32.totalorder %s438_s12, 0 }
  0x24   : > { %p441_p10 = scmp.ne.s32.totalorder (!%p440_p9), %s437_s11, 0 }
  0x25   : > { %120 = sbr.rel (%p440_p9) target bundleno = 60 (0x3c), region = 28 }
  0x2a   : > { %324 = dma.done.wait (%p441_p10), [#allocation3], 128  }
  0x2b   : > { %326 = vsyncadd (%p441_p10), [#allocation3], 4294967168 }
  0x2c   : > { %328 = dma.done.wait (%p441_p10), [#allocation6], 128  }
  0x2d   : > { %330 = vsyncadd (%p441_p10), [#allocation6], 4294967168  ;;  %s341_s24 = smov [#allocation7]   ;;  %v136_v0 = vld [vmem:[#allocation2] sm:$0xff]  ;;  %v137_v1 = vld [vmem:[#allocation5] sm:$0xff]  ;;  %p413_p2 = scmp.eq.s32.totalorder %s196_s10, 1 }
  0x2e   : > { %s147_s25 = sshll.u32 %s341_s24, 4  ;;  %v138_v2 = vadd.f32 %v137_v1, %v136_v0  ;;  %s148_s25 = int_to_ptr.vmem [resolvable:$true] %s147_s25 }
  0x2f   : > { %s295_s27 = scalar_lea.vmem %s148_s25, 128  ;;  %p302_p11 = scmp.lt.s32.totalorder %s148_s25, %s148_s25 }
  0x30   : > { %139 = vst [vmem:[#allocation7] sm:$0xff] %v138_v2  ;;  %p296_p3 = scmp.ne.s32.totalorder %s148_s25, %s295_s27  ;;  %p303_p12 = scmp.lt.s32.totalorder %s295_s27, %s295_s27 }
  0x32   : > { %p297_p5 = pnand %p296_p3, %p413_p2  ;;  %p304_p13 = por %p303_p12, %p302_p11 }
  0x34   : > { %p298_p6 = pneg %p297_p5 }
  0x36   : > { %p305_p0 = pnand %p304_p13, %p298_p6 }
  0x38   : > { %308 = shalt.err (!%p305_p0)
}
  0x39   : > { %216 = dma.vmem_to_hbm [thread:$0]  (%p413_p2), %s148_s25, 128, %s433_s2, [#allocation4]  }
  0x3a   : > { %332 = dma.done.wait (%p413_p2), [#allocation4], 128  }
  0x3b   : > { %334 = vsyncadd (%p413_p2), [#allocation4], 4294967168 }
  0x3c PF: > { %s15_s9 = sadd.s32 1, %s337_s9  }
  0x3d   : > { %p12_p1 = scmp.ge.s32.totalorder %s15_s9, 4  }
  0x3f   :  { %14 = sbr.rel (!%p12_p1) target bundleno = 3 (0x3), region = 61 }
  0x44   :  { %160 = vsyncpa [#allocation3], 1 }
  0x45   :  { %162 = vsyncpa [#allocation3 + $0x1], 1 }
  0x46   :  { %163 = vsyncpa [#allocation6], 1 }
  0x47   :  { %164 = vsyncpa [#allocation4], 1 }
  0x48   :  { %166 = vsyncpa [#allocation4 + $0x1], 1 }

// kernel: tpu_custom_call.1
= control target key start
LH: loop header
LB: loop body
LE: loop exit
PB: predicated region body
PF: predicated region fallthrough
CT: control target
= control target key end

     0   :  { %s3509_s0 = inlined_call_operand.hbm [shape: f32[2,8,128], index: 0, kind: input, shape index: {}]   ;;  %s3510_s1 = inlined_call_operand.hbm [shape: f32[2,1,8], index: 1, kind: input, shape index: {}]   ;;  %s3511_s2 = inlined_call_operand.hbm [shape: bf16[128,128], index: 2, kind: input, shape index: {}]   ;;  %s3512_s3 = inlined_call_operand.hbm [shape: f32[1,128], index: 3, kind: input, shape index: {}]   ;;  %s3513_s4 = inlined_call_operand.vmem [shape: f32[1,128], index: 4, kind: input, shape index: {}]   ;;  %s3514_s5 = inlined_call_operand.vmem [shape: f32[1,128], index: 5, kind: input, shape index: {}]   ;;  %s3515_s6 = inlined_call_operand.hbm [shape: bf16[128,384], index: 6, kind: input, shape index: {}]   ;;  %s3516_s7 = inlined_call_operand.vmem [shape: f32[1,384], index: 7, kind: input, shape index: {}]   ;;  %s3517_s8 = inlined_call_operand.hbm [shape: bf16[128,128], index: 8, kind: input, shape index: {}]   ;;  %s3518_s9 = inlined_call_operand.vmem [shape: f32[1,128], index: 9, kind: input, shape index: {}]   ;;  %s3519_s10 = inlined_call_operand.vmem [shape: f32[1,128], index: 10, kind: input, shape index: {}]   ;;  %s3520_s11 = inlined_call_operand.vmem [shape: f32[1,128], index: 11, kind: input, shape index: {}]   ;;  %s3521_s12 = inlined_call_operand.hbm [shape: bf16[128,256], index: 12, kind: input, shape index: {}]   ;;  %s3522_s13 = inlined_call_operand.vmem [shape: f32[1,256], index: 13, kind: input, shape index: {}]   ;;  %s3523_s14 = inlined_call_operand.hbm [shape: bf16[256,128], index: 14, kind: input, shape index: {}]   ;;  %s3524_s15 = inlined_call_operand.vmem [shape: f32[1,128], index: 15, kind: input, shape index: {}]   ;;  %s3525_s16 = inlined_call_operand.hbm [shape: f32[2,8,128], index: 16, kind: output, shape index: {}]  }
   0x1   :  { %3535 = sst [smem:[#allocation26_spill]] %s3509_s0 }
   0x2   :  { %3536 = sst [smem:[#allocation27_spill]] %s3511_s2 }
   0x3   :  { %3537 = sst [smem:[#allocation28_spill]] %s3512_s3 }
   0x4   :  { %3538 = sst [smem:[#allocation29_spill]] %s3515_s6 }
   0x5   :  { %3539 = sst [smem:[#allocation30_spill]] %s3517_s8 }
   0x6   :  { %3540 = sst [smem:[#allocation31_spill]] %s3520_s11 }
   0x7   :  { %3541 = sst [smem:[#allocation32_spill]] %s3521_s12 }
   0x8   :  { %3542 = sst [smem:[#allocation33_spill]] %s3522_s13 }
   0x9   :  { %3543 = sst [smem:[#allocation34_spill]] %s3523_s14 }
   0xa   :  { %3544 = sst [smem:[#allocation35_spill]] %s3524_s15 }
   0xb   :  { %3545 = sst [smem:[#allocation36_spill]] %s3525_s16 }
   0xc   :  { %21 = vsyncpa [#allocation3], 0 }
   0xd   :  { %23 = vsyncpa [#allocation3 + $0x1], 0 }
   0xe   :  { %24 = vsyncpa [#allocation6], 0 }
   0xf   :  { %26 = vsyncpa [#allocation6 + $0x1], 0 }
  0x10   :  { %27 = vsyncpa [#allocation9], 0 }
  0x11   :  { %28 = vsyncpa [#allocation12], 0 }
  0x12   :  { %29 = vsyncpa [#allocation15], 0 }
  0x13   :  { %30 = vsyncpa [#allocation4], 0 }
  0x14   :  { %32 = vsyncpa [#allocation4 + $0x1], 0  ;;  %s3082_s21 = smov 0   ;;  %s3084_s22 = smov 0  }
  0x15   :  { %s3086_s23 = smov 0   ;;  %s3088_s24 = smov 0  }
  0x16 LB: > { %3546 = sst [smem:[#allocation24_spill]] %s2970_s23  ;;  %s2976_s25 = smov [#allocation7]   ;;  %s2974_s24 = sphi %s3088_s24, %s3586_s24   ;;  %s2970_s23 = sphi %s3086_s23, %s3583_s23   ;;  %s2966_s22 = sphi %s3084_s22, %s3585_s22   ;;  %s2962_s21 = sphi %s3082_s21, %s3584_s21  }
  0x17   : > { %s427_s26 = sshll.u32 %s2976_s25, 4  ;;  %s3103_s27 = sadd.s32 4294967295, %s2974_s24   ;;  %s428_s26 = int_to_ptr.vmem [resolvable:$true] %s427_s26 }
  0x18   : > { %p2162_p0 = scmp.ge.s32.totalorder %s2974_s24, 1  ;;  %p3529_p1 = scmp.eq.s32.totalorder %s3103_s27, 0 }
  0x19   : > { %p415_p2 = scmp.lt.s32.totalorder %s2974_s24, 3  ;;  %s2977_s29 = smov [#allocation8]  }
  0x1a   : > { %s441_s30 = sshll.u32 %s2977_s29, 4  ;;  %s2978_s17 = smov [#allocation11]   ;;  %s442_s30 = int_to_ptr.vmem [resolvable:$true] %s441_s30 }
  0x1b   : > { %p3108_p3 = pnand %p2162_p0, %p415_p2  ;;  %s473_s18 = sshll.u32 %s2978_s17, 4  ;;  %s3121_s18 = int_to_ptr.vmem [resolvable:$true] %s473_s18 }
  0x1c   : > { %s2689_s20 = scalar_lea.vmem %s428_s26, 1024  ;;  %p2697_p11 = scmp.lt.s32.totalorder %s428_s26, %s428_s26 }
  0x1d   : > { %s3547_s28 = scalar_select %p3108_p3, 1, 0 }
  0x1e   : > { %p2476_p5 = pneg %p3108_p3  ;;  %p2690_p8 = scmp.ne.s32.totalorder %s428_s26, %s2689_s20 }
  0x1f   : > { %p2698_p12 = scmp.lt.s32.totalorder %s2689_s20, %s2689_s20 }
  0x20   : > { %p3117_p6 = pnand %p2476_p5, %p3529_p1 }
  0x21   : > { %p2699_p13 = por %p2698_p12, %p2697_p11 }
  0x22   : > { %p3125_p7 = pneg %p3117_p6 }
  0x24   : > { %p2692_p9 = pnand %p2690_p8, %p3125_p7 }
  0x26   : > { %p2693_p10 = pneg %p2692_p9 }
  0x28   : > { %p2700_p0 = pnand %p2699_p13, %p2693_p10 }
  0x2a   : > { %2703 = shalt.err (!%p2700_p0)
}
  0x2b   : > { %s3528_s25 = smov 64   ;;  %s2980_s29 = smov 4  }
  0x2c   : > { %s3550_s2 = sld [smem:[#allocation27_spill]]  ;;  %s2715_s15 = scalar_lea.vmem %s442_s30, 16 }
  0x2d   : > { %p2716_p2 = scmp.ne.s32.totalorder %s442_s30, %s2715_s15  ;;  %s2722_s20 = scalar_lea.vmem %s442_s30, 32 }
  0x2e   : > { %p2723_p9 = scmp.lt.s32.totalorder %s442_s30, %s442_s30  ;;  %p2724_p10 = scmp.lt.s32.totalorder %s2722_s20, %s2715_s15 }
  0x2f   : > { %p2718_p5 = pnand %p2716_p2, %p3125_p7 }
  0x30   : > { %p2725_p11 = por %p2724_p10, %p2723_p9 }
  0x31   : > { %p2719_p8 = pneg %p2718_p5 }
  0x32   : > { %2479 = dma.hbm_to_vmem [thread:$0]  (!%p3117_p6), %s3550_s2, 1024, %s428_s26, [#allocation6], %s3528_s25, %s3528_s25, %s2980_s29  }
  0x33   : > { %p2726_p12 = pnand %p2725_p11, %p2719_p8 }
  0x35   : > { %2729 = shalt.err (!%p2726_p12)
}
  0x36   : > { %s3551_s3 = sld [smem:[#allocation28_spill]]  ;;  %s2741_s16 = scalar_lea.vmem %s3121_s18, 1024 }
  0x37   : > { %p2742_p13 = scmp.ne.s32.totalorder %s3121_s18, %s2741_s16  ;;  %p2749_p5 = scmp.lt.s32.totalorder %s3121_s18, %s3121_s18 }
  0x38   : > { %p2750_p9 = scmp.lt.s32.totalorder %s2741_s16, %s2741_s16 }
  0x39   : > { %p2744_p0 = pnand %p2742_p13, %p3125_p7 }
  0x3a   : > { %p2751_p8 = por %p2750_p9, %p2749_p5 }
  0x3b   : > { %p2745_p2 = pneg %p2744_p0 }
  0x3c   : > { %2482 = dma.hbm_to_vmem [thread:$0]  (!%p3117_p6), %s3551_s3, 16, %s442_s30, [#allocation9]  }
  0x3d   : > { %p2752_p10 = pnand %p2751_p8, %p2745_p2 }
  0x3f   : > { %2755 = shalt.err (!%p2752_p10)
}
  0x40   : > { %s3552_s8 = sld [smem:[#allocation30_spill]]  ;;  %s2981_s15 = smov [#allocation10]  }
  0x41   : > { %s457_s26 = sshll.u32 %s2981_s15, 4  ;;  %s458_s26 = int_to_ptr.vmem [resolvable:$true] %s457_s26 }
  0x42   : > { %s2767_s30 = scalar_lea.vmem %s458_s26, 3072  ;;  %p2775_p0 = scmp.lt.s32.totalorder %s458_s26, %s458_s26 }
  0x43   : > { %p2768_p11 = scmp.ne.s32.totalorder %s458_s26, %s2767_s30  ;;  %p2776_p2 = scmp.lt.s32.totalorder %s2767_s30, %s2767_s30 }
  0x45   : > { %p2770_p12 = pnand %p2768_p11, %p3125_p7  ;;  %p2777_p5 = por %p2776_p2, %p2775_p0 }
  0x46   : > { %2488 = dma.hbm_to_vmem [thread:$0]  (!%p3117_p6), %s3552_s8, 1024, %s3121_s18, [#allocation12], %s3528_s25, %s3528_s25, %s2980_s29  }
  0x47   : > { %p2771_p13 = pneg %p2770_p12 }
  0x49   : > { %p2778_p9 = pnand %p2777_p5, %p2771_p13 }
  0x4b   : > { %2781 = shalt.err (!%p2778_p9)
}
  0x4c   : > { %s2982_s17 = smov 192   ;;  %s2983_s20 = smov 12  }
  0x4d   : > { %s3553_s6 = sld [smem:[#allocation29_spill]]  ;;  %s2984_s11 = smov [#allocation13]  }
  0x4e   : > { %s495_s13 = sshll.u32 %s2984_s11, 4  ;;  %s496_s13 = int_to_ptr.vmem [resolvable:$true] %s495_s13 }
  0x4f   : > { %s2793_s15 = scalar_lea.vmem %s496_s13, 2048  ;;  %p2801_p12 = scmp.lt.s32.totalorder %s496_s13, %s496_s13 }
  0x50   : > { %p2794_p8 = scmp.ne.s32.totalorder %s496_s13, %s2793_s15  ;;  %p2802_p13 = scmp.lt.s32.totalorder %s2793_s15, %s2793_s15 }
  0x52   : > { %p2796_p10 = pnand %p2794_p8, %p3125_p7  ;;  %p2803_p0 = por %p2802_p13, %p2801_p12 }
  0x53   : > { %2485 = dma.hbm_to_vmem [thread:$0]  (!%p3117_p6), %s3553_s6, 3072, %s458_s26, [#allocation9], %s2982_s17, %s2982_s17, %s2983_s20  }
  0x54   : > { %p2797_p11 = pneg %p2796_p10 }
  0x56   : > { %p2804_p2 = pnand %p2803_p0, %p2797_p11 }
  0x58   : > { %2807 = shalt.err (!%p2804_p2)
}
  0x59   : > { %s2985_s30 = smov 128   ;;  %s2986_s25 = smov 8  }
  0x5a   : > { %s3554_s12 = sld [smem:[#allocation32_spill]]  ;;  %s2987_s17 = smov [#allocation14]  }
  0x5b   : > { %s511_s20 = sshll.u32 %s2987_s17, 4  ;;  %s512_s20 = int_to_ptr.vmem [resolvable:$true] %s511_s20 }
  0x5c   : > { %s2819_s18 = scalar_lea.vmem %s512_s20, 2048  ;;  %p2827_p10 = scmp.lt.s32.totalorder %s512_s20, %s512_s20 }
  0x5d   : > { %p2820_p5 = scmp.ne.s32.totalorder %s512_s20, %s2819_s18  ;;  %p2828_p11 = scmp.lt.s32.totalorder %s2819_s18, %s2819_s18 }
  0x5f   : > { %p2822_p9 = pnand %p2820_p5, %p3125_p7  ;;  %p2829_p12 = por %p2828_p11, %p2827_p10 }
  0x60   : > { %2491 = dma.hbm_to_vmem [thread:$0]  (!%p3117_p6), %s3554_s12, 2048, %s496_s13, [#allocation12], %s2985_s30, %s2985_s30, %s2986_s25  }
  0x61   : > { %p2823_p8 = pneg %p2822_p9 }
  0x63   : > { %p2830_p13 = pnand %p2829_p12, %p2823_p8 }
  0x65   : > { %2833 = shalt.err (!%p2830_p13)
}
  0x66   : > { %s3555_s11 = smov 64   ;;  %s3556_s14 = sld [smem:[#allocation34_spill]] }
  0x67   : > { %s2161_s0 = sadd.s32 4294967294, %s2974_s24   ;;  %s3187_s19 = sadd.s32 1, %s2974_s24  }
  0x68   : > { %s42_s13 = ssub.s32 %s2974_s24, %s3187_s19  ;;  %s45_s30 = sadd.s32 1, %s2970_s23 }
  0x69   : > { %p43_p7 = scmp.eq.s32.totalorder %s42_s13, 0  ;;  %p52_p0 = scmp.ne.s32.totalorder %s2970_s23, %s2966_s22 }
  0x6a   : > { %p53_p2 = scmp.eq.s32.totalorder %s2974_s24, 0  ;;  %p58_p5 = scmp.ne.s32.totalorder %s2966_s22, %s2962_s21 }
  0x6b   : > { %s3198_s16 = scalar_select %p43_p7, %s2970_s23, %s45_s30  }
  0x6c   : > { %2494 = dma.hbm_to_vmem [thread:$0]  (!%p3117_p6), %s3556_s14, 2048, %s512_s20, [#allocation15], %s3555_s11, %s3555_s11, %s2980_s29  }
  0x6d   : > { %3557 = sst [smem:[#allocation25_spill]] %s3198_s16  ;;  %p3200_p9 = por %p53_p2, %p52_p0 }
  0x6e   : > { %p3206_p6 = por %p3529_p1, %p58_p5  ;;  %p402_p8 = scmp.eq.s32.totalorder %s3103_s27, 1 }
  0x6f   : > { %p408_p10 = scmp.eq.s32.totalorder %s2161_s0, 1  ;;  %p2512_p11 = scmp.lt.s32.totalorder %s2974_s24, 2 }
  0x70   : > { %s3559_s29 = scalar_select %p3206_p6, 1, 0 }
  0x71   : > { %s3213_s17 = sand.u32 1, %s2970_s23   ;;  %p3215_p12 = por %p402_p8, %p52_p0 }
  0x72   : > { %p3219_p13 = por %p408_p10, %p58_p5  ;;  %s2170_s11 = sshll.u32 %s3213_s17, 3 }
  0x73   : > { %s3560_s20 = scalar_select %p3215_p12, 1, 0 }
  0x74   : > { %s3561_s18 = scalar_select %p3219_p13, 1, 0 }
  0x75   : > { %s2171_s15 = sshll.u32 %s2974_s24, 7  ;;  %s3562_s30 = sld [smem:[#allocation26_spill]] }
  0x76   : > { %s532_s0 = scalar_lea.vmem [#allocation2], %s2170_s11  ;;  %p3234_p7 = pnand %p2512_p11, %p3200_p9 }
  0x77   : > { %s539_s3 = sshll.u32 %s532_s0, 4  ;;  %s529_s12 = scalar_lea.sflag [#allocation3], %s3213_s17  ;;  %s3230_s3 = int_to_ptr.vmem [resolvable:$true] %s539_s3 }
  0x78   : > { %p2836_p2 = pneg %p3234_p7 }
  0x7b   : > { %s3228_s2 = scalar_lea.hbm %s3562_s30, %s2171_s15  ;;  %s2839_s26 = scalar_lea.hbm %s3562_s30, 256 }
  0x7c   : > { %s2834_s14 = scalar_lea.hbm %s3228_s2, 128  ;;  %p2840_p9 = scmp.lt.s32.totalorder %s3228_s2, %s3562_s30 }
  0x7d   : > { %p2835_p0 = scmp.ne.s32.totalorder %s3228_s2, %s2834_s14  ;;  %p2841_p10 = scmp.lt.s32.totalorder %s2839_s26, %s2834_s14 }
  0x7f   : > { %p2837_p5 = pnand %p2836_p2, %p2835_p0  ;;  %p2842_p11 = por %p2841_p10, %p2840_p9 }
  0x81   : > { %p2838_p8 = pneg %p2837_p5 }
  0x83   : > { %p2843_p4 = pnand %p2842_p11, %p2838_p8 }
  0x85   : > { %2846 = shalt.err (!%p2843_p4)
}
  0x86   : > { %s2847_s0 = scalar_lea.vmem %s3230_s3, 128  ;;  %s2988_s11 = smov [#allocation2]  }
  0x87   : > { %p2848_p1 = scmp.ne.s32.totalorder %s3230_s3, %s2847_s0  ;;  %s2852_s15 = sshll.u32 %s2988_s11, 4  ;;  %s2853_s15 = int_to_ptr.vmem [resolvable:$false] %s2852_s15 }
  0x88   : > { %s2854_s8 = scalar_lea.vmem %s2853_s15, 256  ;;  %p2855_p13 = scmp.lt.s32.totalorder %s3230_s3, %s2853_s15 }
  0x89   : > { %p2850_p0 = pnand %p2848_p1, %p2836_p2  ;;  %p2856_p12 = scmp.lt.s32.totalorder %s2854_s8, %s2847_s0 }
  0x8b   : > { %p2851_p5 = pneg %p2850_p0  ;;  %p2857_p6 = por %p2856_p12, %p2855_p13 }
  0x8d   : > { %p2858_p9 = pnand %p2857_p6, %p2851_p5 }
  0x8f   : > { %2861 = shalt.err (!%p2858_p9)
}
  0x90   : > { %2498 = dma.hbm_to_vmem [thread:$0]  (!%p3234_p7), %s3228_s2, 128, %s3230_s3, %s529_s12  }
  0x91   : > { %s2172_s14 = sshll.u32 %s2974_s24, 4  ;;  %s549_s26 = scalar_lea.vmem [#allocation5], %s3213_s17 }
  0x92   : > { %s556_s25 = sshll.u32 %s549_s26, 4  ;;  %s554_s15 = scalar_lea.hbm %s3510_s1, %s2172_s14  ;;  %s557_s25 = int_to_ptr.vmem [resolvable:$true] %s556_s25 }
  0x93   : > { %s3564_s8 = sand.u32 1, %s2974_s24   ;;  %s2862_s30 = scalar_lea.hbm %s554_s15, 16 }
  0x94   : > { %s547_s0 = scalar_lea.sflag [#allocation6], %s3564_s8  ;;  %p2863_p1 = scmp.ne.s32.totalorder %s554_s15, %s2862_s30 }
  0x95   : > { %s2867_s2 = scalar_lea.hbm %s3510_s1, 32  ;;  %p2868_p12 = scmp.lt.s32.totalorder %s554_s15, %s3510_s1 }
  0x96   : > { %p2865_p4 = pnand %p2863_p1, %p2836_p2  ;;  %p2869_p13 = scmp.lt.s32.totalorder %s2867_s2, %s2862_s30 }
  0x98   : > { %p2866_p6 = pneg %p2865_p4  ;;  %p2870_p8 = por %p2869_p13, %p2868_p12 }
  0x9a   : > { %p2871_p10 = pnand %p2870_p8, %p2866_p6 }
  0x9c   : > { %2874 = shalt.err (!%p2871_p10)
}
  0x9d   : > { %s2875_s17 = scalar_lea.vmem %s557_s25, 16  ;;  %s2989_s14 = smov [#allocation5]  }
  0x9e   : > { %p2876_p11 = scmp.ne.s32.totalorder %s557_s25, %s2875_s17  ;;  %s2880_s26 = sshll.u32 %s2989_s14, 4  ;;  %s2881_s26 = int_to_ptr.vmem [resolvable:$false] %s2880_s26 }
  0x9f   : > { %s2882_s23 = scalar_lea.vmem %s2881_s26, 32  ;;  %p2883_p9 = scmp.lt.s32.totalorder %s557_s25, %s2881_s26 }
  0xa0   : > { %p2878_p0 = pnand %p2876_p11, %p2836_p2  ;;  %p2884_p1 = scmp.lt.s32.totalorder %s2882_s23, %s2875_s17 }
  0xa2   : > { %p2879_p5 = pneg %p2878_p0  ;;  %p2885_p4 = por %p2884_p1, %p2883_p9 }
  0xa4   : > { %p2886_p3 = pnand %p2885_p4, %p2879_p5 }
  0xa6   : > { %2889 = shalt.err (!%p2886_p3)
}
  0xa7   : > { %2501 = dma.hbm_to_vmem [thread:$0]  (!%p3234_p7), %s554_s15, 16, %s557_s25, %s547_s0  }
  0xa8   : > { %p3565_p6 = scmp.ne.s32.totalorder %s3547_s28, 0 }
  0xa9   : > { %s3288_s16 = sand.u32 (!%p3565_p6), 1, %s2966_s22   ;;  %p3566_p2 = scmp.ne.s32.totalorder (!%p3565_p6), %s3559_s29, 0 }
  0xaa   : > { %565 = sbr.rel (%p3565_p6) target bundleno = 2843 (0xb1b), region = 84  ;;  %s2174_s30 = sshll.u32 (!%p3565_p6), %s3288_s16, 3 }
  0xab   : > { %s568_s13 = scalar_lea.sflag (!%p3565_p6), [#allocation3], %s3288_s16  ;;  %s3294_s11 = scalar_lea.vmem (!%p3565_p6), [#allocation2], %s2174_s30 }
  0xaf   : > { %2933 = dma.done.wait (%p3566_p2), %s568_s13, 128  }
  0xb0   : > { %2935 = vsyncadd (%p3566_p2), %s568_s13, 4294967168  ;;  %s576_s6 = sand.u32 1, %s3103_s27   ;;  %s579_s25 = scalar_lea.vmem [#allocation5], %s3288_s16 }
  0xb1   : > { %s577_s28 = scalar_lea.sflag [#allocation6], %s576_s6 }
  0xb2   : > { %2937 = dma.done.wait (%p3566_p2), %s577_s28, 16  }
  0xb3   : > { %2939 = vsyncadd (%p3566_p2), %s577_s28, 4294967280  ;;  %p3567_p3 = scmp.eq.s32.totalorder %s3103_s27, 0 }
  0xb5   : > { %2941 = dma.done.wait (%p3567_p3), [#allocation6], 1024   ;;  %p3568_p7 = pmov %p3567_p3 }
  0xb6   : > { %p3569_p12 = pmov %p3567_p3 }
  0xb7   : > { %2943 = vsyncadd (%p3568_p7), [#allocation6], 4294966272 }
  0xb8   : > { %2945 = dma.done.wait (%p3569_p12), [#allocation9], 3088   ;;  %p3570_p13 = pmov %p3567_p3 }
  0xb9   : > { %p3571_p8 = pmov %p3567_p3 }
  0xba   : > { %2947 = vsyncadd (%p3570_p13), [#allocation9], 4294964208 }
  0xbb   : > { %2949 = dma.done.wait (%p3571_p8), [#allocation12], 3072   ;;  %p3572_p10 = pmov %p3567_p3 }
  0xbc   : > { %p3573_p11 = pmov %p3567_p3 }
  0xbd   : > { %2951 = vsyncadd (%p3572_p10), [#allocation12], 4294964224 }
  0xbe   : > { %2953 = dma.done.wait (%p3573_p11), [#allocation15], 2048   ;;  %p3574_p0 = pmov %p3567_p3 }
  0xbf   : > { %v2990_v0 = vmov 0.0   ;;  %vm2991_vm0 = vmmov 0   ;;  %v2570_v1 = vld [vmem:[#allocation7 + $0x38] sm:$0xff]   ;;  %v2571_v2 = vld [vmem:[#allocation7 + $0x30] sm:$0xff]   ;;  %v2572_v3 = vld [vmem:[#allocation7 + $0x28] sm:$0xff]   ;;  %v2992_v37 = vmov 0   ;;  %v833_v56 = vlaneseq }
  0xc0   : > { %2955 = vsyncadd (%p3574_p0), [#allocation15], 4294965248  ;;  %2338 = vmatprep.subr.bf16.mxu0 %v2990_v0  ;;  %2354 = vmatprep.mubr.msk.bf16.mxu0 %vm2991_vm0, %v2990_v0  ;;  %v2573_v4 = vld [vmem:[#allocation7 + $0x20] sm:$0xff]   ;;  %v2574_v5 = vld [vmem:[#allocation7 + $0x18] sm:$0xff]   ;;  %vm1091_vm1 = vcmask 261120   ;;  %s2993_s12 = smov 64  }
  0xc1   : > { %2339 = vmatpush3.bf16.msra.mxu0 %v2570_v1  ;;  %v2575_v6 = vld [vmem:[#allocation7 + $0x10] sm:$0xff]   ;;  %v2576_v7 = vld [vmem:[#allocation7 + $0x8] sm:$0xff]   ;;  %v2577_v8 = vld [vmem:[#allocation7] sm:$0xff]   ;;  %1008 = vmatprep.mubr.bf16.mxu1 %v2992_v37  ;;  %v3360_v57 = vshrl.u32 %v833_v56, 7  ;;  %s2994_s17 = smov 96   ;;  %s2995_s14 = smov 32  }
  0xc2   : > { %2340 = vmatprep.subr.bf16.mxu0 %v2990_v0  ;;  %v657_v9 = vld [vmem:[%s3294_s11] sm:$0xff]  ;;  %v2182_v11 = vld [vmem:[#allocation8] ss:$0 sm:$0xff]  ;;  %vm1328_vm2 = vcmask 1043456   ;;  %vm1276_vm3 = vcmask 64512   ;;  %vm1523_vm4 = vcmask 523264  }
  0xc3   : > { %v674_v10 = vpack.c.bf16 %v657_v9, %v657_v9  ;;  %v2578_v17 = vld [vmem:[#allocation10 + $0xac] ss:$12 sps:$4 sm:$0xff]   ;;  %v2580_v18 = vld [vmem:[#allocation10 + $0xa8] ss:$12 sps:$4 sm:$0xff]   ;;  %v2581_v19 = vld [vmem:[#allocation10 + $0xb0] ss:$12 sps:$4 sm:$0xff]  }
  0xc4   : > { %v2582_v20 = vld [vmem:[#allocation10 + $0x94] ss:$12 sps:$4 sm:$0xff]   ;;  %976 = vmatprep.subr.bf16.mxu1 %v2578_v17  ;;  %v2585_v21 = vld [vmem:[#allocation10 + $0x98] ss:$12 sps:$4 sm:$0xff]   ;;  %v2584_v22 = vld [vmem:[#allocation10 + $0x90] ss:$12 sps:$4 sm:$0xff]  }
  0xc5   : > { %2341 = vmatpush3.bf16.msra.mxu0 %v2571_v2  ;;  %977 = vmatpush1.bf16.msra.mxu1 %v2580_v18  ;;  %v2586_v27 = vld [vmem:[#allocation10 + $0x7c] ss:$12 sps:$4 sm:$0xff]   ;;  %v2588_v28 = vld [vmem:[#allocation10 + $0x78] ss:$12 sps:$4 sm:$0xff]   ;;  %v2589_v29 = vld [vmem:[#allocation10 + $0x80] ss:$12 sps:$4 sm:$0xff]  }
  0xc6   : > { %2342 = vmatprep.subr.bf16.mxu0 %v2990_v0  ;;  %978 = vmatprep.subr.bf16.mxu1 %v2582_v20  ;;  %v2590_v30 = vld [vmem:[#allocation10 + $0x64] ss:$12 sps:$4 sm:$0xff]   ;;  %v2592_v31 = vld [vmem:[#allocation10 + $0x60] ss:$12 sps:$4 sm:$0xff]   ;;  %v2593_v32 = vld [vmem:[#allocation10 + $0x68] ss:$12 sps:$4 sm:$0xff]  }
  0xc7   : > { %v2594_v33 = vld [vmem:[#allocation10 + $0x4c] ss:$12 sps:$4 sm:$0xff]   ;;  %v2596_v34 = vld [vmem:[#allocation10 + $0x48] ss:$12 sps:$4 sm:$0xff]   ;;  %v2597_v35 = vld [vmem:[#allocation10 + $0x50] ss:$12 sps:$4 sm:$0xff]  }
  0xc8   : > { %v2598_v36 = vld [vmem:[#allocation10 + $0x34] ss:$12 sps:$4 sm:$0xff]   ;;  %v2600_v38 = vld [vmem:[#allocation10 + $0x30] ss:$12 sps:$4 sm:$0xff]   ;;  %v2601_v39 = vld [vmem:[#allocation10 + $0x38] ss:$12 sps:$4 sm:$0xff]  }
  0xc9   : > { %2343 = vmatpush3.bf16.msra.mxu0 %v2572_v3  ;;  %979 = vmatpush1.bf16.msra.mxu1 %v2584_v22  ;;  %v2602_v40 = vld [vmem:[#allocation10 + $0x1c] ss:$12 sps:$4 sm:$0xff]   ;;  %v2604_v41 = vld [vmem:[#allocation10 + $0x18] ss:$12 sps:$4 sm:$0xff]   ;;  %v2605_v42 = vld [vmem:[#allocation10 + $0x20] ss:$12 sps:$4 sm:$0xff]  }
  0xca   : > { %2344 = vmatprep.subr.bf16.mxu0 %v2990_v0  ;;  %980 = vmatprep.subr.bf16.mxu1 %v2586_v27  ;;  %v2606_v43 = vld [vmem:[#allocation10 + $0x4] ss:$12 sps:$4 sm:$0xff]   ;;  %v2608_v44 = vld [vmem:[#allocation10] ss:$12 sps:$4 sm:$0xff]   ;;  %v2609_v45 = vld [vmem:[#allocation10 + $0x8] ss:$12 sps:$4 sm:$0xff]  }
  0xcb   : > { %v2191_v50 = vld [vmem:[%s3513_s4] ss:$0 sm:$0xff]  ;;  %v3363_v58 = vsub.s32 0, %v3360_v57  ;;  %v839_v60 = vsub.s32 1, %v3360_v57  ;;  %v843_v20 = vsub.s32 2, %v3360_v57  ;;  %vm1525_vm5 = vcmask 785408  }
  0xcc   : > { %v2192_v52 = vld [vmem:[%s3514_s5] ss:$0 sm:$0xff]  ;;  %s3576_s8 = sld [smem:[#allocation33_spill]]  ;;  %s2001_s6 = scalar_lea.sflag [#allocation4], %s3288_s16 }
  0xcd   : > { %2345 = vmatpush3.bf16.msra.mxu0 %v2573_v4  ;;  %981 = vmatpush1.bf16.msra.mxu1 %v2588_v28  ;;  %v831_v59 = vld [vmem:[%s3516_s7] sm:$0x7]  ;;  %s3577_s3 = sld [smem:[#allocation35_spill]]  ;;  %p3579_p9 = scmp.ne.s32.totalorder %s3560_s20, 0 }
  0xce   : > { %2346 = vmatprep.subr.bf16.mxu0 %v2990_v0  ;;  %982 = vmatprep.subr.bf16.mxu1 %v2590_v30  ;;  %v836_v61 = vrot.slane %v831_v59, %v3363_v58  ;;  %v840_v62 = vrot.slane %v831_v59, %v839_v60  ;;  %v844_v22 = vrot.slane %v831_v59, %v843_v20  ;;  %s3578_s13 = sld [smem:[#allocation36_spill]] }
  0xd1   : > { %2347 = vmatpush3.bf16.msra.mxu0 %v2574_v5  ;;  %983 = vmatpush1.bf16.msra.mxu1 %v2592_v31 }
  0xd2   : > { %2348 = vmatprep.subr.bf16.mxu0 %v2990_v0  ;;  %984 = vmatprep.subr.bf16.mxu1 %v2594_v33 }
  0xd5   : > { %2349 = vmatpush3.bf16.msra.mxu0 %v2575_v6  ;;  %985 = vmatpush1.bf16.msra.mxu1 %v2596_v34 }
  0xd6   : > { %2350 = vmatprep.subr.bf16.mxu0 %v2990_v0  ;;  %986 = vmatprep.subr.bf16.mxu1 %v2598_v36 }
  0xd9   : > { %2351 = vmatpush3.bf16.msra.mxu0 %v2576_v7  ;;  %987 = vmatpush1.bf16.msra.mxu1 %v2600_v38 }
  0xda   : > { %2352 = vmatprep.subr.bf16.mxu0 %v2990_v0  ;;  %988 = vmatprep.subr.bf16.mxu1 %v2602_v40 }
  0xdd   : > { %2353 = vmatpush3.bf16.msra.mxu0 %v2577_v8  ;;  %989 = vmatpush1.bf16.msra.mxu1 %v2604_v41 }
  0xde   : > { %2358 = vmatprep.subr.bf16.mxu0 %v2990_v0  ;;  %990 = vmatprep.subr.bf16.mxu1 %v2606_v43 }
  0xe0   : > { %2355 = vmatmul.mubr.bf16.vlgmr.msra.gmra.mxu0 %v674_v10 }
  0xe1   : > { %2374 = vmatprep.mubr.msk.bf16.mxu0 %vm2991_vm0, %v2990_v0  ;;  %2359 = vmatpush3.bf16.msra.mxu0 %v2581_v19 }
  0xe2   : > { %2360 = vmatprep.subr.bf16.mxu0 %v2990_v0  ;;  %991 = vmatpush1.bf16.msra.mxu1 %v2608_v44 }
  0xe3   : > { %2378 = vmatprep.subr.bf16.mxu1 %v2990_v0 }
  0xe5   : > { %2361 = vmatpush3.bf16.msra.mxu0 %v2585_v21 }
  0xe6   : > { %2362 = vmatprep.subr.bf16.mxu0 %v2990_v0 }
  0xe9   : > { %2363 = vmatpush3.bf16.msra.mxu0 %v2589_v29  ;;  %v1057_v29 = vld [vmem:[%s579_s25] sm:$0x1]  ;;  %s3575_s25 = sld [smem:[#allocation31_spill]] }
  0xea   : > { %2364 = vmatprep.subr.bf16.mxu0 %v2990_v0  ;;  %v1058_v30 = vsub.f32 1.0, %v1057_v29 }
  0xec   : > { %v1059_v31 = vmul.f32 -1e+09, %v1058_v30 }
  0xed   : > { %2365 = vmatpush3.bf16.msra.mxu0 %v2593_v32 }
  0xee   : > { %2366 = vmatprep.subr.bf16.mxu0 %v2990_v0  ;;  %v1089_v32 = vrot.slane %v1059_v31, %v3363_v58 }
  0xf1   : > { %2367 = vmatpush3.bf16.msra.mxu0 %v2597_v35 }
  0xf2   : > { %2368 = vmatprep.subr.bf16.mxu0 %v2990_v0 }
  0xf5   : > { %2369 = vmatpush3.bf16.msra.mxu0 %v2601_v39 }
  0xf6   : > { %2370 = vmatprep.subr.bf16.mxu0 %v2990_v0 }
  0xf9   : > { %2371 = vmatpush3.bf16.msra.mxu0 %v2605_v42 }
  0xfa   : > { %2372 = vmatprep.subr.bf16.mxu0 %v2990_v0 }
  0xfd   : > { %2373 = vmatpush3.bf16.msra.mxu0 %v2609_v45 }
  0xfe   : > { %2426 = vmatprep.subr.bf16.mxu0 %v2990_v0 }
 0x1a0   : > { %v764_v12 = vpop.f32.mrf.mxu0 }
 0x1a1   : > { %v3336_v13 = vadd.f32 %v2182_v11, %v764_v12 }
 0x1a2   : > { %v2356_v14 = vpop.f32.mrf.mxu0 }
 0x1a3   : > { %772 = vadd.xlane.f32.xlu0 %v3336_v13 }
 0x1a4   : > { %v767_v15 = vpop.f32.mrf.mxu0 }
 0x1a6   : > { %v2357_v16 = vpop.f32.mrf.mxu0 }
 0x22c   : > { %v773_v23 = vpop.xlane.xlu0 %772 }
 0x22d   : > { %v775_v24 = vmul.f32 0.0078125, %v773_v23 }
 0x22f   : > { %v776_v25 = vsub.f32 %v3336_v13, %v775_v24 }
 0x231   : > { %v777_v26 = vmul.f32 %v776_v25, %v776_v25 }
 0x233   : > { %778 = vadd.xlane.f32.xlu0 %v777_v26 }
 0x2bc   : > { %v779_v46 = vpop.xlane.xlu0 %778 }
 0x2bd   : > { %v780_v47 = vmul.f32 0.0078125, %v779_v46 }
 0x2bf   : > { %v781_v48 = vadd.f32 1e-05, %v780_v47 }
 0x2c1   : > { %2658 = vrsqrt.f32 %v781_v48 }
 0x2ce   : > { %v2659_v49 = vpop.eup %2658 }
 0x2cf   : > { %v783_v51 = vmul.f32 %v2659_v49, %v776_v25 }
 0x2d1   : > { %v790_v53 = vmul.f32 %v2191_v50, %v783_v51 }
 0x2d3   : > { %v797_v54 = vadd.f32 %v2192_v52, %v790_v53 }
 0x2d5   : > { %v830_v55 = vpack.c.bf16 %v797_v54, %v797_v54 }
 0x2d7   : > { %1009 = vmatmul.mubr.bf16.vlgmr.msra.gmra.mxu1 %v830_v55  ;;  %2375 = vmatmul.mubr.bf16.vlgmr.msra.gmra.mxu0 %v830_v55 }
 0x2d8   : > { %2380 = vmatprep.mubr.msk.bf16.mxu1 %vm2991_vm0, %v2990_v0  ;;  %2442 = vmatprep.mubr.msk.bf16.mxu0 %vm2991_vm0, %v2990_v0 }
 0x397   : > { %v1010_v63 = vpop.f32.mrf.mxu1  ;;  %v1051_v1 = vpop.f32.mrf.mxu0 }
 0x398   : > { %v1011_v2 = vadd.f32 %v1010_v63, %v836_v61  ;;  %v1052_v24 = vadd.f32 %v1051_v1, %v844_v22 }
 0x399   : > { %v1012_v3 = vpop.f32.mrf.mxu1  ;;  %v2376_v4 = vpop.f32.mrf.mxu0 }
 0x39a   : > { %v1013_v5 = vadd.f32 %v1012_v3, %v840_v62  ;;  %v1060_v8 = vmul.f32 0.17677669, %v1011_v2  ;;  %v3396_v26 = vpack.c.bf16 %v1052_v24, %v1052_v24 }
 0x39b   : > { %v1014_v6 = vpop.f32.mrf.mxu1  ;;  %v1054_v7 = vpop.f32.mrf.mxu0 }
 0x39c   : > { %v1069_v9 = vpack.c.bf16 %v1013_v5, %v1013_v5  ;;  %v1061_v14 = vpack.c.bf16 %v1060_v8, %v1060_v8  ;;  %v1330_v28 = vsel %vm1328_vm2, %v3396_v26, 0 }
 0x39d   : > { %v1015_v10 = vpop.f32.mrf.mxu1  ;;  %v2377_v11 = vpop.f32.mrf.mxu0 }
 0x39e   : > { %1073 = vrot.lane.b32.xlu0 %v1069_v9, %s2993_s12  ;;  %1071 = vrot.lane.b32.xlu1 %v1069_v9, %s2994_s17  ;;  %v1096_v12 = vsel %vm1091_vm1, %v1069_v9, 0 }
 0x39f   : > { %2379 = vmatpush3.bf16.xpose.msra.mxu1 %v1096_v12 }
 0x3a0   : > { %2384 = vmatprep.subr.bf16.mxu1 %v2990_v0 }
 0x3a2   : > { %1063 = vrot.lane.b32.xlu1 %v1061_v14, %s2994_s17 }
 0x3a6   : > { %1065 = vrot.lane.b32.xlu1 %v1061_v14, %s2993_s12  ;;  %2381 = vmatmul.mubr.msk.bf16.vlgmr.msra.gmra.mxu1 %vm1091_vm1, %v1061_v14 }
 0x3a7   : > { %2386 = vmatprep.mubr.msk.bf16.mxu1 %vm2991_vm0, %v2990_v0 }
 0x3aa   : > { %1075 = vrot.lane.b32.xlu1 %v1069_v9, %s2995_s14 }
 0x3ae   : > { %1067 = vrot.lane.b32.xlu1 %v1061_v14, %s2995_s14 }
 0x410   : > { %v1072_v15 = vpop.permute.xlu1 %1071  ;;  %v1074_v18 = vpop.permute.xlu0 %1073 }
 0x411   : > { %v1142_v16 = vsel %vm1091_vm1, %v1072_v15, 0  ;;  %v1188_v21 = vsel %vm1091_vm1, %v1074_v18, 0 }
 0x412   : > { %2385 = vmatpush3.bf16.xpose.msra.mxu1 %v1142_v16 }
 0x413   : > { %2390 = vmatprep.subr.bf16.mxu1 %v2990_v0 }
 0x414   : > { %v1064_v17 = vpop.permute.xlu1 %1063 }
 0x418   : > { %v1066_v19 = vpop.permute.xlu1 %1065 }
 0x419   : > { %2387 = vmatmul.mubr.msk.bf16.vlgmr.msra.gmra.mxu1 %vm1091_vm1, %v1064_v17 }
 0x41a   : > { %2391 = vmatpush3.bf16.xpose.msra.mxu1 %v1188_v21  ;;  %2392 = vmatprep.mubr.msk.bf16.mxu1 %vm2991_vm0, %v2990_v0 }
 0x41b   : > { %2396 = vmatprep.subr.bf16.mxu1 %v2990_v0 }
 0x41c   : > { %v1076_v23 = vpop.permute.xlu1 %1075 }
 0x41d   : > { %v1234_v25 = vsel %vm1091_vm1, %v1076_v23, 0 }
 0x420   : > { %v1068_v27 = vpop.permute.xlu1 %1067 }
 0x421   : > { %2393 = vmatmul.mubr.msk.bf16.vlgmr.msra.gmra.mxu1 %vm1091_vm1, %v1066_v19 }
 0x422   : > { %2397 = vmatpush3.bf16.xpose.msra.mxu1 %v1234_v25  ;;  %2398 = vmatprep.mubr.msk.bf16.mxu1 %vm2991_vm0, %v2990_v0 }
 0x423   : > { %2402 = vmatprep.subr.bf16.mxu1 %v2990_v0 }
 0x429   : > { %2399 = vmatmul.mubr.msk.bf16.vlgmr.msra.gmra.mxu1 %vm1091_vm1, %v1068_v27 }
 0x42a   : > { %2403 = vmatpush3.bf16.msra.mxu1 %v1330_v28  ;;  %2404 = vmatprep.mubr.msk.bf16.mxu1 %vm2991_vm0, %v2990_v0 }
 0x42b   : > { %2408 = vmatprep.subr.bf16.mxu1 %v2990_v0 }
 0x466   : > { %v1132_v33 = vpop.f32.mrf.mxu1 }
 0x467   : > { %v1133_v34 = vadd.f32 %v1132_v33, %v1089_v32 }
 0x468   : > { %v2382_v35 = vpop.f32.mrf.mxu1 }
 0x469   : > { %v1277_v36 = vsel %vm1276_vm3, %v1133_v34, -inf }
 0x46a   : > { %1278 = vmax.xlane.f32.xlu1 %v1277_v36  ;;  %v1135_v38 = vpop.f32.mrf.mxu1 }
 0x46c   : > { %v2383_v39 = vpop.f32.mrf.mxu1 }
 0x4d9   : > { %v1178_v40 = vpop.f32.mrf.mxu1 }
 0x4da   : > { %v1179_v41 = vadd.f32 %v1178_v40, %v1089_v32 }
 0x4db   : > { %v2388_v42 = vpop.f32.mrf.mxu1 }
 0x4dc   : > { %v1280_v43 = vsel %vm1276_vm3, %v1179_v41, -inf }
 0x4dd   : > { %1281 = vmax.xlane.f32.xlu0 %v1280_v43  ;;  %v1181_v44 = vpop.f32.mrf.mxu1 }
 0x4df   : > { %v2389_v45 = vpop.f32.mrf.mxu1 }
 0x4e1   : > { %v1224_v46 = vpop.f32.mrf.mxu1 }
 0x4e2   : > { %v1225_v47 = vadd.f32 %v1224_v46, %v1089_v32  ;;  %v2610_v46 = vld [vmem:[#allocation11 + $0x38] sm:$0xff]  }
 0x4e3   : > { %v2394_v48 = vpop.f32.mrf.mxu1  ;;  %2427 = vmatpush3.bf16.msra.mxu0 %v2610_v46  ;;  %v2649_v46 = vld [vmem:[#allocation14 + $0x20] sm:$0xff]  }
 0x4e4   : > { %v1283_v49 = vsel %vm1276_vm3, %v1225_v47, -inf  ;;  %2428 = vmatprep.subr.bf16.mxu0 %v2990_v0 }
 0x4e5   : > { %1284 = vmax.xlane.f32.xlu1 %v1283_v49  ;;  %v1227_v50 = vpop.f32.mrf.mxu1 }
 0x4e6   : > { %v2612_v50 = vld [vmem:[#allocation11 + $0x28] sm:$0xff]  }
 0x4e7   : > { %v2395_v51 = vpop.f32.mrf.mxu1 }
 0x4e9   : > { %v1270_v52 = vpop.f32.mrf.mxu1 }
 0x4ea   : > { %v1271_v53 = vadd.f32 %v1270_v52, %v1089_v32 }
 0x4eb   : > { %v2400_v54 = vpop.f32.mrf.mxu1 }
 0x4ec   : > { %v1286_v55 = vsel %vm1276_vm3, %v1271_v53, -inf }
 0x4ed   : > { %1287 = vmax.xlane.f32.xlu1 %v1286_v55  ;;  %v1273_v56 = vpop.f32.mrf.mxu1  ;;  %v2614_v55 = vld [vmem:[#allocation11 + $0x18] sm:$0xff]  }
 0x4ef   : > { %v2401_v59 = vpop.f32.mrf.mxu1 }
 0x4f3   : > { %v1279_v61 = vpop.xlane.xlu1 %1278 }
 0x4f4   : > { %v1289_v62 = vsub.f32 %v1133_v34, %v1279_v61  ;;  %v2615_v61 = vld [vmem:[#allocation11 + $0x10] sm:$0xff]  }
 0x4f6   : > { %v1293_v63 = vmul.f32 1.442695, %v1289_v62  ;;  %v2616_v62 = vld [vmem:[#allocation11 + $0x8] sm:$0xff]  }
 0x4f8   : > { %2660 = vpow2.f32 %v1293_v63  ;;  %v2617_v63 = vld [vmem:[#allocation11] sm:$0xff]  }
 0x505   : > { %v2661_v1 = vpop.eup %2660 }
 0x506   : > { %v1301_v2 = vsel %vm1276_vm3, %v2661_v1, 0.0 }
 0x507   : > { %1302 = vadd.xlane.f32.xlu0 %v1301_v2 }
 0x566   : > { %v1282_v3 = vpop.xlane.xlu0 %1281 }
 0x567   : > { %v1290_v4 = vsub.f32 %v1179_v41, %v1282_v3 }
 0x569   : > { %v1295_v5 = vmul.f32 1.442695, %v1290_v4 }
 0x56b   : > { %2662 = vpow2.f32 %v1295_v5 }
 0x56e   : > { %v1285_v6 = vpop.xlane.xlu1 %1284 }
 0x56f   : > { %v1291_v7 = vsub.f32 %v1225_v47, %v1285_v6  ;;  %v2611_v47 = vld [vmem:[#allocation11 + $0x30] sm:$0xff]  }
 0x570   : > { %2429 = vmatpush3.bf16.msra.mxu0 %v2611_v47  ;;  %v2650_v47 = vld [vmem:[#allocation14 + $0x58] sm:$0xff]  }
 0x571   : > { %v1297_v8 = vmul.f32 1.442695, %v1291_v7  ;;  %2430 = vmatprep.subr.bf16.mxu0 %v2990_v0 }
 0x573   : > { %2664 = vpow2.f32 %v1297_v8 }
 0x574   : > { %2431 = vmatpush3.bf16.msra.mxu0 %v2612_v50  ;;  %v2653_v50 = vld [vmem:[#allocation14 + $0x10] sm:$0xff]  }
 0x575   : > { %2432 = vmatprep.subr.bf16.mxu0 %v2990_v0 }
 0x576   : > { %v1288_v15 = vpop.xlane.xlu1 %1287 }
 0x577   : > { %v1292_v16 = vsub.f32 %v1271_v53, %v1288_v15 }
 0x578   : > { %v2663_v9 = vpop.eup %2662 }
 0x579   : > { %v1304_v10 = vsel %vm1276_vm3, %v2663_v9, 0.0  ;;  %v1299_v17 = vmul.f32 1.442695, %v1292_v16 }
 0x57a   : > { %1305 = vadd.xlane.f32.xlu1 %v1304_v10 }
 0x580   : > { %v2665_v11 = vpop.eup %2664 }
 0x581   : > { %v1307_v12 = vsel %vm1276_vm3, %v2665_v11, 0.0 }
 0x582   : > { %1308 = vadd.xlane.f32.xlu0 %v1307_v12  ;;  %v2233_v12 = vld [vmem:[%s3518_s9] ss:$0 sm:$0xff] }
 0x58b   : > { %1081 = vrot.lane.b32.xlu1 %v3396_v26, %s2993_s12 }
 0x590   : > { %v1303_v14 = vpop.xlane.xlu0 %1302 }
 0x591   : > { %2666 = vrcp.f32 %v1303_v14 }
 0x592   : > { %2668 = vpow2.f32 %v1299_v17 }
 0x598   : > { %1079 = vrot.lane.b32.xlu0 %v3396_v26, %s2994_s17 }
 0x59e   : > { %v2667_v18 = vpop.eup %2666 }
 0x59f   : > { %v1317_v19 = vmul.f32 %v2667_v18, %v2661_v1  ;;  %v2669_v21 = vpop.eup %2668 }
 0x5a0   : > { %v1310_v22 = vsel %vm1276_vm3, %v2669_v21, 0.0 }
 0x5a1   : > { %v1321_v20 = vpack.c.bf16 %v1317_v19, %v1317_v19  ;;  %v2618_v19 = vld [vmem:[#allocation13 + $0x70] ss:$8 sps:$4 sm:$0xff]  }
 0x5a3   : > { %2405 = vmatmul.mubr.msk.bf16.vlgmr.msra.gmra.mxu1 %vm1276_vm3, %v1321_v20  ;;  %v2620_v20 = vld [vmem:[#allocation13 + $0x74] ss:$8 sps:$4 sm:$0xff]  }
 0x5a4   : > { %2410 = vmatprep.mubr.msk.bf16.mxu1 %vm2991_vm0, %v2990_v0 }
 0x5af   : > { %1311 = vadd.xlane.f32.xlu1 %v1310_v22  ;;  %v2621_v22 = vld [vmem:[#allocation13 + $0x60] ss:$8 sps:$4 sm:$0xff]  }
 0x5c0   : > { %1083 = vrot.lane.b32.xlu1 %v3396_v26, %s2995_s14 }
 0x603   : > { %v1306_v23 = vpop.xlane.xlu1 %1305 }
 0x604   : > { %2670 = vrcp.f32 %v1306_v23 }
 0x607   : > { %v1082_v30 = vpop.permute.xlu1 %1081 }
 0x608   : > { %v1422_v32 = vsel %vm1328_vm2, %v1082_v30, 0  ;;  %v2629_v30 = vld [vmem:[#allocation13 + $0x44] ss:$8 sps:$4 sm:$0xff]  }
 0x60b   : > { %v1309_v24 = vpop.xlane.xlu0 %1308 }
 0x60c   : > { %2672 = vrcp.f32 %v1309_v24 }
 0x60f   : > { %v1080_v25 = vpop.permute.xlu0 %1079 }
 0x610   : > { %v1376_v27 = vsel %vm1328_vm2, %v1080_v25, 0 }
 0x611   : > { %v2671_v28 = vpop.eup %2670  ;;  %2409 = vmatpush3.bf16.msra.mxu1 %v1376_v27  ;;  %v2626_v27 = vld [vmem:[#allocation13 + $0x54] ss:$8 sps:$4 sm:$0xff]  }
 0x612   : > { %2414 = vmatprep.subr.bf16.mxu1 %v2990_v0  ;;  %v1318_v29 = vmul.f32 %v2671_v28, %v2663_v9  ;;  %v2624_v28 = vld [vmem:[#allocation13 + $0x50] ss:$8 sps:$4 sm:$0xff]  }
 0x614   : > { %v1322_v31 = vpack.c.bf16 %v1318_v29, %v1318_v29  ;;  %v2627_v29 = vld [vmem:[#allocation13 + $0x40] ss:$8 sps:$4 sm:$0xff]  }
 0x616   : > { %2411 = vmatmul.mubr.msk.bf16.vlgmr.msra.gmra.mxu1 %vm1276_vm3, %v1322_v31  ;;  %v2632_v31 = vld [vmem:[#allocation13 + $0x34] ss:$8 sps:$4 sm:$0xff]  }
 0x617   : > { %2415 = vmatpush3.bf16.msra.mxu1 %v1422_v32  ;;  %2416 = vmatprep.mubr.msk.bf16.mxu1 %vm2991_vm0, %v2990_v0  ;;  %v2630_v32 = vld [vmem:[#allocation13 + $0x30] ss:$8 sps:$4 sm:$0xff]  }
 0x618   : > { %2420 = vmatprep.subr.bf16.mxu1 %v2990_v0 }
 0x619   : > { %v2673_v26 = vpop.eup %2672 }
 0x61a   : > { %v1319_v33 = vmul.f32 %v2673_v26, %v2665_v11  ;;  %v2635_v26 = vld [vmem:[#allocation13 + $0x24] ss:$8 sps:$4 sm:$0xff]  }
 0x61c   : > { %v1323_v34 = vpack.c.bf16 %v1319_v33, %v1319_v33  ;;  %v2633_v33 = vld [vmem:[#allocation13 + $0x20] ss:$8 sps:$4 sm:$0xff]  }
 0x61e   : > { %2417 = vmatmul.mubr.msk.bf16.vlgmr.msra.gmra.mxu1 %vm1276_vm3, %v1323_v34  ;;  %v2638_v34 = vld [vmem:[#allocation13 + $0x14] ss:$8 sps:$4 sm:$0xff]  }
 0x61f   : > { %2422 = vmatprep.mubr.msk.bf16.mxu1 %vm2991_vm0, %v2990_v0 }
 0x638   : > { %v1312_v35 = vpop.xlane.xlu1 %1311 }
 0x639   : > { %2674 = vrcp.f32 %v1312_v35  ;;  %v2636_v35 = vld [vmem:[#allocation13 + $0x10] ss:$8 sps:$4 sm:$0xff]  }
 0x63c   : > { %v1084_v36 = vpop.permute.xlu1 %1083 }
 0x63d   : > { %v1468_v38 = vsel %vm1328_vm2, %v1084_v36, 0  ;;  %v2641_v36 = vld [vmem:[#allocation13 + $0x4] ss:$8 sps:$4 sm:$0xff]  }
 0x63e   : > { %2421 = vmatpush3.bf16.msra.mxu1 %v1468_v38  ;;  %v2639_v38 = vld [vmem:[#allocation13] ss:$8 sps:$4 sm:$0xff]  }
 0x63f   : > { %1777 = vmatprep.subr.bf16.mxu1 %v2620_v20 }
 0x646   : > { %v2675_v39 = vpop.eup %2674 }
 0x647   : > { %v1320_v40 = vmul.f32 %v2675_v39, %v2669_v21  ;;  %v2623_v21 = vld [vmem:[#allocation13 + $0x64] ss:$8 sps:$4 sm:$0xff]   ;;  %v2642_v39 = vld [vmem:[#allocation14 + $0x78] sm:$0xff]  }
 0x649   : > { %v1324_v41 = vpack.c.bf16 %v1320_v40, %v1320_v40  ;;  %v2643_v40 = vld [vmem:[#allocation14 + $0x38] sm:$0xff]  }
 0x64b   : > { %2423 = vmatmul.mubr.msk.bf16.vlgmr.msra.gmra.mxu1 %vm1276_vm3, %v1324_v41  ;;  %v2644_v41 = vld [vmem:[#allocation14 + $0x70] sm:$0xff]  }
 0x64c   : > { %1809 = vmatprep.mubr.bf16.mxu1 %v2992_v37  ;;  %v2613_v37 = vld [vmem:[#allocation11 + $0x20] sm:$0xff]   ;;  %1778 = vmatpush1.bf16.msra.mxu1 %v2618_v19 }
 0x64d   : > { %2433 = vmatpush3.bf16.msra.mxu0 %v2613_v37  ;;  %1779 = vmatprep.subr.bf16.mxu1 %v2623_v21 }
 0x64e   : > { %2434 = vmatprep.subr.bf16.mxu0 %v2990_v0 }
 0x650   : > { %1780 = vmatpush1.bf16.msra.mxu1 %v2621_v22 }
 0x651   : > { %2435 = vmatpush3.bf16.msra.mxu0 %v2614_v55  ;;  %1781 = vmatprep.subr.bf16.mxu1 %v2626_v27 }
 0x652   : > { %2436 = vmatprep.subr.bf16.mxu0 %v2990_v0 }
 0x654   : > { %1782 = vmatpush1.bf16.msra.mxu1 %v2624_v28 }
 0x655   : > { %2437 = vmatpush3.bf16.msra.mxu0 %v2615_v61  ;;  %1783 = vmatprep.subr.bf16.mxu1 %v2629_v30 }
 0x656   : > { %2438 = vmatprep.subr.bf16.mxu0 %v2990_v0 }
 0x658   : > { %1784 = vmatpush1.bf16.msra.mxu1 %v2627_v29 }
 0x659   : > { %2439 = vmatpush3.bf16.msra.mxu0 %v2616_v62  ;;  %1785 = vmatprep.subr.bf16.mxu1 %v2632_v31 }
 0x65a   : > { %2440 = vmatprep.subr.bf16.mxu0 %v2990_v0 }
 0x65c   : > { %1786 = vmatpush1.bf16.msra.mxu1 %v2630_v32 }
 0x65d   : > { %2441 = vmatpush3.bf16.msra.mxu0 %v2617_v63  ;;  %1787 = vmatprep.subr.bf16.mxu1 %v2635_v26  ;;  %v2654_v63 = vld [vmem:[#allocation14 + $0x48] sm:$0xff]  }
 0x65e   : > { %2316 = vmatprep.subr.bf16.mxu0 %v2642_v39 }
 0x660   : > { %1788 = vmatpush1.bf16.msra.mxu1 %v2633_v33 }
 0x661   : > { %1789 = vmatprep.subr.bf16.mxu1 %v2638_v34 }
 0x663   : > { %v1366_v42 = vpop.f32.mrf.mxu1 }
 0x664   : > { %1790 = vmatpush1.bf16.msra.mxu1 %v2636_v35 }
 0x665   : > { %v2406_v43 = vpop.f32.mrf.mxu1  ;;  %1791 = vmatprep.subr.bf16.mxu1 %v2641_v36 }
 0x666   : > { %v2646_v43 = vld [vmem:[#allocation14 + $0x68] sm:$0xff]  }
 0x667   : > { %v1369_v44 = vpop.f32.mrf.mxu1 }
 0x668   : > { %1792 = vmatpush1.bf16.msra.mxu1 %v2639_v38  ;;  %v2647_v44 = vld [vmem:[#allocation14 + $0x28] sm:$0xff]  }
 0x669   : > { %v2407_v45 = vpop.f32.mrf.mxu1 }
 0x66a   : > { %v2648_v45 = vld [vmem:[#allocation14 + $0x60] sm:$0xff]  }
 0x6d6   : > { %v1412_v48 = vpop.f32.mrf.mxu1 }
 0x6d7   : > { %1511 = vrot.lane.b32.xlu0 %v1412_v48, %s2995_s14  ;;  %v2651_v48 = vld [vmem:[#allocation14 + $0x18] sm:$0xff]  }
 0x6d8   : > { %v2412_v49 = vpop.f32.mrf.mxu1 }
 0x6d9   : > { %v2652_v49 = vld [vmem:[#allocation14 + $0x50] sm:$0xff]  }
 0x6da   : > { %v1415_v51 = vpop.f32.mrf.mxu1 }
 0x6dc   : > { %v2413_v52 = vpop.f32.mrf.mxu1 }
 0x6de   : > { %v1458_v53 = vpop.f32.mrf.mxu1 }
 0x6df   : > { %1515 = vrot.lane.b32.xlu1 %v1458_v53, %s2993_s12  ;;  %s2270_s12 = sshll.u32 %s3103_s27, 7  ;;  %s2996_s27 = smov [#allocation16]  }
 0x6e0   : > { %v2418_v54 = vpop.f32.mrf.mxu1  ;;  %s2012_s11 = scalar_lea.hbm %s3578_s13, %s2270_s12 }
 0x6e1   : > { %v2234_v54 = vld [vmem:[%s3519_s10] ss:$0 sm:$0xff] }
 0x6e2   : > { %v1461_v56 = vpop.f32.mrf.mxu1 }
 0x6e3   : > { %v2235_v56 = vld [vmem:[%s3575_s25] ss:$0 sm:$0xff]  ;;  %s2894_s25 = sshll.u32 %s2996_s27, 4  ;;  %s2895_s25 = int_to_ptr.vmem [resolvable:$false] %s2894_s25 }
 0x6e4   : > { %v2419_v59 = vpop.f32.mrf.mxu1 }
 0x70b   : > { %v1504_v1 = vpop.f32.mrf.mxu1 }
 0x70c   : > { %1519 = vrot.lane.b32.xlu0 %v1504_v1, %s2994_s17  ;;  %v2655_v1 = vld [vmem:[#allocation14 + $0x8] sm:$0xff]   ;;  %s655_s17 = scalar_lea.vmem [#allocation16], %s2174_s30  ;;  %s2896_s30 = scalar_lea.vmem %s2895_s25, 256 }
 0x70d   : > { %v2424_v2 = vpop.f32.mrf.mxu1  ;;  %s2014_s14 = sshll.u32 %s655_s17, 4  ;;  %s2015_s14 = int_to_ptr.vmem [resolvable:$true] %s2014_s14 }
 0x70e   : > { %v2656_v2 = vld [vmem:[#allocation14 + $0x40] sm:$0xff]   ;;  %s2890_s28 = scalar_lea.vmem %s2015_s14, 128  ;;  %p2897_p6 = scmp.lt.s32.totalorder %s2015_s14, %s2895_s25 }
 0x70f   : > { %v1507_v3 = vpop.f32.mrf.mxu1  ;;  %p2891_p5 = scmp.ne.s32.totalorder %s2015_s14, %s2890_s28  ;;  %p2898_p2 = scmp.lt.s32.totalorder %s2896_s30, %s2890_s28 }
 0x710   : > { %v2657_v3 = vld [vmem:[#allocation14] sm:$0xff]  }
 0x711   : > { %v2425_v4 = vpop.f32.mrf.mxu1  ;;  %p2892_p1 = pnand %p2891_p5, %p3579_p9  ;;  %p2899_p3 = por %p2898_p2, %p2897_p6 }
 0x712   : > { %v1685_v4 = vld [vmem:[%s3576_s8] sm:$0x3] }
 0x713   : > { %p2893_p4 = pneg %p2892_p1 }
 0x715   : > { %p2900_p7 = pnand %p2899_p3, %p2893_p4 }
 0x749   : > { %v1512_v5 = vpop.permute.xlu0 %1511 }
 0x74a   : > { %v1522_v7 = vsel %vm1091_vm1, %v1366_v42, %v1512_v5  ;;  %v2645_v42 = vld [vmem:[#allocation14 + $0x30] sm:$0xff]   ;;  %v1690_v5 = vrot.slane %v1685_v4, %v3363_v58 }
 0x751   : > { %v1516_v6 = vpop.permute.xlu1 %1515 }
 0x752   : > { %v1524_v8 = vsel %vm1523_vm4, %v1522_v7, %v1516_v6  ;;  %v1694_v6 = vrot.slane %v1685_v4, %v839_v60  ;;  %v2268_v60 = vld [vmem:[%s3577_s3] ss:$0 sm:$0xff] }
 0x77e   : > { %v1520_v9 = vpop.permute.xlu0 %1519 }
 0x77f   : > { %v1526_v10 = vsel %vm1525_vm5, %v1524_v8, %v1520_v9 }
 0x780   : > { %v1543_v11 = vpack.c.bf16 %v1526_v10, %v1526_v10 }
 0x782   : > { %2443 = vmatmul.mubr.bf16.vlgmr.msra.gmra.mxu0 %v1543_v11 }
 0x783   : > { %2317 = vmatpush3.bf16.msra.mxu0 %v2643_v40 }
 0x784   : > { %2318 = vmatprep.subr.bf16.mxu0 %v2644_v41 }
 0x787   : > { %2319 = vmatpush3.bf16.msra.mxu0 %v2645_v42 }
 0x788   : > { %2320 = vmatprep.subr.bf16.mxu0 %v2646_v43 }
 0x78b   : > { %2321 = vmatpush3.bf16.msra.mxu0 %v2647_v44 }
 0x78c   : > { %2322 = vmatprep.subr.bf16.mxu0 %v2648_v45 }
 0x78f   : > { %2323 = vmatpush3.bf16.msra.mxu0 %v2649_v46 }
 0x790   : > { %2324 = vmatprep.subr.bf16.mxu0 %v2650_v47 }
 0x793   : > { %2325 = vmatpush3.bf16.msra.mxu0 %v2651_v48 }
 0x794   : > { %2326 = vmatprep.subr.bf16.mxu0 %v2652_v49 }
 0x797   : > { %2327 = vmatpush3.bf16.msra.mxu0 %v2653_v50 }
 0x798   : > { %2328 = vmatprep.subr.bf16.mxu0 %v2654_v63 }
 0x79b   : > { %2329 = vmatpush3.bf16.msra.mxu0 %v2655_v1 }
 0x79c   : > { %2330 = vmatprep.subr.bf16.mxu0 %v2656_v2 }
 0x79f   : > { %2331 = vmatpush3.bf16.msra.mxu0 %v2657_v3 }
 0x842   : > { %v1626_v0 = vpop.f32.mrf.mxu0 }
 0x843   : > { %v1632_v14 = vadd.f32 %v1626_v0, %v3336_v13 }
 0x844   : > { %v2444_v15 = vpop.f32.mrf.mxu0 }
 0x845   : > { %v3452_v16 = vadd.f32 %v2233_v12, %v1632_v14 }
 0x846   : > { %v1629_v17 = vpop.f32.mrf.mxu0 }
 0x847   : > { %1643 = vadd.xlane.f32.xlu1 %v3452_v16 }
 0x848   : > { %v2445_v18 = vpop.f32.mrf.mxu0 }
 0x8d0   : > { %v1644_v23 = vpop.xlane.xlu1 %1643 }
 0x8d1   : > { %v1645_v24 = vmul.f32 0.0078125, %v1644_v23 }
 0x8d3   : > { %v1646_v25 = vsub.f32 %v3452_v16, %v1645_v24 }
 0x8d5   : > { %v1647_v13 = vmul.f32 %v1646_v25, %v1646_v25 }
 0x8d7   : > { %1648 = vadd.xlane.f32.xlu0 %v1647_v13 }
 0x960   : > { %v1649_v51 = vpop.xlane.xlu0 %1648 }
 0x961   : > { %v1650_v52 = vmul.f32 0.0078125, %v1649_v51 }
 0x963   : > { %v1651_v37 = vadd.f32 1e-05, %v1650_v52 }
 0x965   : > { %2676 = vrsqrt.f32 %v1651_v37 }
 0x972   : > { %v2677_v53 = vpop.eup %2676 }
 0x973   : > { %v1653_v55 = vmul.f32 %v2677_v53, %v1646_v25 }
 0x975   : > { %v1660_v59 = vmul.f32 %v2234_v54, %v1653_v55 }
 0x977   : > { %v1667_v61 = vadd.f32 %v2235_v56, %v1660_v59 }
 0x979   : > { %v1684_v62 = vpack.c.bf16 %v1667_v61, %v1667_v61 }
 0x97b   : > { %1810 = vmatmul.mubr.bf16.vlgmr.msra.gmra.mxu1 %v1684_v62 }
 0xa3b   : > { %v1811_v7 = vpop.f32.mrf.mxu1 }
 0xa3c   : > { %v1812_v8 = vadd.f32 %v1811_v7, %v1690_v5 }
 0xa3d   : > { %v1813_v9 = vpop.f32.mrf.mxu1 }
 0xa3e   : > { %v1814_v10 = vadd.f32 %v1813_v9, %v1694_v6  ;;  %v1818_v11 = vmax.f32 %v1812_v8, 0.0 }
 0xa3f   : > { %v1815_v0 = vpop.f32.mrf.mxu1 }
 0xa40   : > { %v1819_v12 = vmax.f32 %v1814_v10, 0.0  ;;  %v1852_v17 = vpack.c.bf16 %v1818_v11, %v1818_v11 }
 0xa41   : > { %v1816_v14 = vpop.f32.mrf.mxu1 }
 0xa42   : > { %v1853_v15 = vpack.c.bf16 %v1819_v12, %v1819_v12 }
 0xa44   : > { %1982 = vmatprep.mubr.bf16.mxu0 %v1853_v15 }
 0xa45   : > { %1983 = vmatmul.mubr.bf16.vlgmr.msra.gmra.mxu0 %v1852_v17 }
 0xb05   : > { %v2332_v18 = vpop.f32.mrf.mxu0 }
 0xb07   : > { %v2333_v58 = vpop.f32.mrf.mxu0 }
 0xb08   : > { %v2334_v57 = vadd.f32 %v2333_v58, %v2332_v18 }
 0xb09   : > { %v2335_v19 = vpop.f32.mrf.mxu0 }
 0xb0a   : > { %v1990_v20 = vadd.f32 %v2334_v57, %v3452_v16 }
 0xb0b   : > { %v2336_v21 = vpop.f32.mrf.mxu0 }
 0xb0c   : > { %v1998_v22 = vadd.f32 %v2268_v60, %v1990_v20 }
 0xb0e   : > { %1999 = vst [vmem:[%s655_s17] sm:$0xff] %v1998_v22 }
 0xb0f   : > { %2903 = shalt.err (!%p2900_p7)
}
 0xb10   : > { %s2904_s29 = scalar_lea.hbm %s2012_s11, 128  ;;  %s2908_s8 = scalar_lea.hbm %s3578_s13, 256 }
 0xb11   : > { %p2905_p12 = scmp.ne.s32.totalorder %s2012_s11, %s2904_s29  ;;  %p2909_p10 = scmp.lt.s32.totalorder %s2012_s11, %s3578_s13 }
 0xb12   : > { %p2910_p11 = scmp.lt.s32.totalorder %s2908_s8, %s2904_s29 }
 0xb13   : > { %p2906_p13 = pnand %p2905_p12, %p3579_p9 }
 0xb14   : > { %p2911_p0 = por %p2910_p11, %p2909_p10 }
 0xb15   : > { %p2907_p8 = pneg %p2906_p13 }
 0xb17   : > { %p2912_p5 = pnand %p2911_p0, %p2907_p8 }
 0xb19   : > { %2915 = shalt.err (!%p2912_p5)
}
 0xb1a   : > { %2474 = dma.vmem_to_hbm [thread:$0]  (%p3579_p9), %s2015_s14, 128, %s2012_s11, %s2001_s6  }
 0xb1b PF: > { %s2026_s3 = sand.u32 1, %s2962_s21   ;;  %p3580_p1 = scmp.ne.s32.totalorder %s3561_s18, 0 }
 0xb1c   : > { %p3581_p4 = scmp.ge.s32.totalorder %s2974_s24, 2  ;;  %s2027_s12 = scalar_lea.sflag [#allocation4], %s2026_s3 }
 0xb1e   : > { %p2503_p6 = pnand %p3581_p4, %p3580_p1 }
 0xb20   : > { %p2504_p2 = pneg %p2503_p6 }
 0xb22   : > { %2957 = dma.done.wait (%p2504_p2), %s2027_s12, 128  }
 0xb23   : > { %2959 = vsyncadd (%p2504_p2), %s2027_s12, 4294967168  ;;  %s3582_s17 = sld [smem:[#allocation24_spill]]  ;;  %p35_p3 = scmp.ge.s32.totalorder %s3187_s19, 4  }
 0xb24   : > { %s3583_s23 = sld [smem:[#allocation25_spill]]  ;;  %s3584_s21 = smov %s2966_s22 }
 0xb25   : > { %s3586_s24 = smov %s3187_s19  ;;  %37 = sbr.rel (!%p35_p3) target bundleno = 22 (0x16), region = 166 }
 0xb29   : > { %s3585_s22 = smov %s3582_s17 }
 0xb2a   :  { %2032 = vsyncpa [#allocation3], 1 }
 0xb2b   :  { %2034 = vsyncpa [#allocation3 + $0x1], 1 }
 0xb2c   :  { %2035 = vsyncpa [#allocation6], 1 }
 0xb2d   :  { %2037 = vsyncpa [#allocation6 + $0x1], 1 }
 0xb2e   :  { %2038 = vsyncpa [#allocation9], 1 }
 0xb2f   :  { %2039 = vsyncpa [#allocation12], 1 }
 0xb30   :  { %2040 = vsyncpa [#allocation15], 1 }
 0xb31   :  { %2041 = vsyncpa [#allocation4], 1 }
 0xb32   :  { %2043 = vsyncpa [#allocation4 + $0x1], 1 }

</bundles_post_ra>
